<compile_context>
chip_gen: v5e
topology: v5e:2x2
jax: 0.10.0
libtpu: 0.0.40
codegen_flags: <defaults>
</compile_context>

<pallas_src>
import functools
import math

import jax
import jax.numpy as jnp
from jax.experimental import pallas as pl
from jax.experimental.pallas import tpu as pltpu


_VMEM = pl.BlockSpec(memory_space=pltpu.MemorySpace.VMEM)


# ----------------------------------------------------------------------------
# Fused kernel: fc1 + ReLU -> stacked BiLSTM -> fc2, fully VMEM resident
# ----------------------------------------------------------------------------
def _make_fused_kernel(T, B, H, num_layers):
    H4 = 4 * H
    B2 = 2 * B

    def kernel(*refs):
        # refs: x2 | fc1_w fc1_b | per layer (wih_both, whh_both, b_f, b_b)
        #       | fc2_w fc2_b | out
        x_ref, fc1_w_ref, fc1_b_ref = refs[0:3]
        p = 3
        layer_refs = []
        for _ in range(num_layers):
            layer_refs.append(refs[p:p + 4])
            p += 4
        fc2_w_ref, fc2_b_ref = refs[p], refs[p + 1]
        out_ref = refs[p + 2]

        # Static row mask: rows [0:B] = forward direction, rows [B:2B] = backward.
        fwd_rows = jax.lax.broadcasted_iota(jnp.int32, (B2, H4), 0) < B

        # ---- fc1 + ReLU (dropout is identity at inference) -----------------
        xb = x_ref[...].astype(jnp.bfloat16)
        a = jnp.dot(xb, fc1_w_ref[...], preferred_element_type=jnp.float32)
        a = jnp.maximum(a + fc1_b_ref[...], 0.0)                 # (T*B, H) f32

        # ---- stacked bidirectional LSTM -------------------------------------
        for (wih_ref, whh_ref, bf_ref, bb_ref) in layer_refs:
            # Hoisted input projections for all timesteps, both directions,
            # in one bf16 matmul: columns [0:4H] = fwd, [4H:8H] = bwd.
            zz = jnp.dot(a.astype(jnp.bfloat16), wih_ref[...],
                         preferred_element_type=jnp.float32)     # (T*B, 8H) f32
            zf = (zz[:, :H4] + bf_ref[...]).reshape(T, B, H4)
            zb = (zz[:, H4:] + bb_ref[...]).reshape(T, B, H4)
            # Per-step merged gate pre-activations: rows [0:B] = fwd @ t=s,
            # rows [B:2B] = bwd @ t=T-1-s.  Independent of the recurrent state,
            # so hoisted out of the serial chain.
            z_steps = [jnp.concatenate([zf[s], zb[T - 1 - s]], axis=0)
                       for s in range(T)]

            whh = whh_ref[...]                                   # (H, 8H) f32
            h_m = jnp.zeros((B2, H), jnp.float32)                # [h_fwd ; h_bwd]
            c_m = jnp.zeros((B2, H), jnp.float32)
            hs = []

            # Fully unrolled recurrence (T static & small -> scheduler sees all).
            for s in range(T):
                rec = jnp.dot(h_m, whh,
                              preferred_element_type=jnp.float32)  # (2B, 8H)
                # Per-row direction select; both halves are 128-aligned slices.
                g = z_steps[s] + jnp.where(fwd_rows, rec[:, :H4], rec[:, H4:])
                # Full-128-lane EUP passes; single-tanh sigmoid (one EUP op).
                sig = 0.5 * jnp.tanh(0.5 * g) + 0.5
                tng = jnp.tanh(g)
                # Gate lane layout (packed in the wrapper): i | f | o | g.
                # 3 cross-lane extractions per step is the floor; they run on
                # the XLU, off the EUP/VPU critical slots.
                c_m = sig[:, H:2 * H] * c_m + sig[:, :H] * tng[:, 3 * H:]
                h_m = sig[:, 2 * H:3 * H] * jnp.tanh(c_m)
                hs.append(h_m)

            # Layer output at time t = [h_fwd(t) | h_bwd(t)], assembled once at
            # the layer boundary from live vregs (no scratch stores/reloads).
            a = jnp.concatenate(
                [jnp.concatenate([hs[t][:B], hs[T - 1 - t][B:]], axis=-1)
                 for t in range(T)], axis=0)                     # (T*B, 2H) f32

        # ---- fc2 -------------------------------------------------------------
        y = jnp.dot(a.astype(jnp.bfloat16), fc2_w_ref[...],
                    preferred_element_type=jnp.float32) + fc2_b_ref[...]
        out_ref[...] = y                                         # (T*B, O)

    return kernel


# ----------------------------------------------------------------------------
# Wrapper (reshapes live here, not in the kernel)
# ----------------------------------------------------------------------------
def rnn_pos_forward(x, packed, *, hidden_size, output_size, num_layers):
    T, B, I = x.shape
    x2 = x.reshape(T * B, I)

    inputs = [x2, packed["fc1_w_t"], packed["fc1_b"]]
    for lp in packed["lstm"]:
        inputs += [lp["wih_both"], lp["whh_both"], lp["b_f"], lp["b_b"]]
    inputs += [packed["fc2_w_t"], packed["fc2_b"]]

    kernel = _make_fused_kernel(T, B, hidden_size, num_layers)
    y2 = pl.pallas_call(
        kernel,
        out_shape=jax.ShapeDtypeStruct((T * B, output_size), jnp.float32),
        in_specs=[_VMEM] * len(inputs),
        out_specs=_VMEM,
        compiler_params=pltpu.CompilerParams(vmem_limit_bytes=32 * 1024 * 1024),
    )(*inputs)
    return y2.reshape(T, B, output_size)


# ----------------------------------------------------------------------------
# Raw (PyTorch-layout) parameters — mirrors the module __init__
# ----------------------------------------------------------------------------
def init_raw_params(key, input_size, output_size, hidden_size, num_layers):
    H = hidden_size
    keys = jax.random.split(key, 2 + 8 * num_layers)
    ki = iter(keys)

    def xavier_normal(k, out_f, in_f):
        std = math.sqrt(2.0 / (in_f + out_f))
        return std * jax.random.normal(k, (out_f, in_f), dtype=jnp.float32)

    raw = {
        "fc1_w": xavier_normal(next(ki), H, input_size),          # (H, I)
        "fc1_b": jnp.full((H,), 0.1, jnp.float32),
        "fc2_w": xavier_normal(next(ki), output_size, 2 * H),     # (O, 2H)
        "fc2_b": jnp.full((output_size,), 0.1, jnp.float32),
        "lstm": [],
    }
    bound = 1.0 / math.sqrt(H)

    def uni(k, shape):
        return jax.random.uniform(k, shape, jnp.float32, -bound, bound)

    for layer in range(num_layers):
        in_l = H if layer == 0 else 2 * H
        lp = {}
        for d in ("f", "b"):
            lp["w_ih_" + d] = uni(next(ki), (4 * H, in_l))        # gate rows i,f,g,o
            lp["w_hh_" + d] = uni(next(ki), (4 * H, H))
            lp["b_ih_" + d] = uni(next(ki), (4 * H,))
            lp["b_hh_" + d] = uni(next(ki), (4 * H,))
        raw["lstm"].append(lp)
    return raw


# ----------------------------------------------------------------------------
# Kernel-layout packing: gate reorder (i,f,g,o)->(i,f,o,g), transpose,
# direction-concat on lanes, combined biases, bf16 weight casts.
# ----------------------------------------------------------------------------
def pack_params(raw, hidden_size):
    H = hidden_size

    def reorder(m):  # PyTorch gate order (i,f,g,o) along axis 0 -> (i,f,o,g)
        return jnp.concatenate([m[:2 * H], m[3 * H:4 * H], m[2 * H:3 * H]], axis=0)

    packed = {
        "fc1_w_t": raw["fc1_w"].T.astype(jnp.bfloat16),           # (I, H)
        "fc1_b": raw["fc1_b"][None, :],                           # (1, H) f32
        "fc2_w_t": raw["fc2_w"].T.astype(jnp.bfloat16),           # (2H, O)
        "fc2_b": raw["fc2_b"][None, :],                           # (1, O) f32
        "lstm": [],
    }
    for lp in raw["lstm"]:
        wih_f = reorder(lp["w_ih_f"]).T                           # (in_l, 4H)
        wih_b = reorder(lp["w_ih_b"]).T
        whh_f = reorder(lp["w_hh_f"]).T                           # (H, 4H)
        whh_b = reorder(lp["w_hh_b"]).T
        packed["lstm"].append({
            "wih_both": jnp.concatenate([wih_f, wih_b], axis=1).astype(jnp.bfloat16),
            "whh_both": jnp.concatenate([whh_f, whh_b], axis=1),  # (H, 8H) f32
            "b_f": reorder(lp["b_ih_f"] + lp["b_hh_f"])[None, :], # (1, 4H) f32
            "b_b": reorder(lp["b_ih_b"] + lp["b_hh_b"])[None, :],
        })
    return packed


# ----------------------------------------------------------------------------
# Pure-JAX f32 reference (PyTorch semantics, raw layout) for validation
# ----------------------------------------------------------------------------
def _lstm_cell(x_t, h, c, w_ih, w_hh, b_ih, b_hh, H):
    g = x_t @ w_ih.T + b_ih + h @ w_hh.T + b_hh
    i = jax.nn.sigmoid(g[:, :H])
    f = jax.nn.sigmoid(g[:, H:2 * H])
    gg = jnp.tanh(g[:, 2 * H:3 * H])
    o = jax.nn.sigmoid(g[:, 3 * H:])
    c = f * c + i * gg
    return o * jnp.tanh(c), c


def reference_forward(x, raw, hidden_size, num_layers):
    H = hidden_size
    T, B, _ = x.shape
    a = jnp.maximum(jnp.einsum("tbi,hi->tbh", x, raw["fc1_w"]) + raw["fc1_b"], 0.0)
    for layer in range(num_layers):
        lp = raw["lstm"][layer]
        hf, hb = [None] * T, [None] * T
        h, c = jnp.zeros((B, H)), jnp.zeros((B, H))
        for t in range(T):
            h, c = _lstm_cell(a[t], h, c, lp["w_ih_f"], lp["w_hh_f"],
                              lp["b_ih_f"], lp["b_hh_f"], H)
            hf[t] = h
        h, c = jnp.zeros((B, H)), jnp.zeros((B, H))
        for t in reversed(range(T)):
            h, c = _lstm_cell(a[t], h, c, lp["w_ih_b"], lp["w_hh_b"],
                              lp["b_ih_b"], lp["b_hh_b"], H)
            hb[t] = h
        a = jnp.stack([jnp.concatenate([hf[t], hb[t]], axis=-1) for t in range(T)],
                      axis=0)
    return jnp.einsum("tbh,oh->tbo", a, raw["fc2_w"]) + raw["fc2_b"]


# ----------------------------------------------------------------------------
if __name__ == "__main__":
    # Small shapes consistent with the module's forward:
    # x: (seq_len=8, batch=2, input_size=16)
    input_frame = 8       # stored by the module but unused in forward
    input_size = 16
    output_size = 10
    hidden_size = 32
    num_layers = 2
    T, B = 8, 2

    key = jax.random.PRNGKey(0)
    k_x, k_p = jax.random.split(key)
    x = jax.random.normal(k_x, (T, B, input_size), dtype=jnp.float32)
    raw = init_raw_params(k_p, input_size, output_size, hidden_size, num_layers)
    packed = pack_params(raw, hidden_size)

    fwd = jax.jit(functools.partial(
        rnn_pos_forward,
        hidden_size=hidden_size,
        output_size=output_size,
        num_layers=num_layers,
    ))
    y = fwd(x, packed)
    jax.block_until_ready(y)

    assert y.shape == (T, B, output_size)
    assert bool(jnp.all(jnp.isfinite(y)))

    # Validate against the f32 PyTorch-semantics reference.  The kernel uses
    # bf16 MXU inputs for fc1 / input projections / fc2, so the tolerance is
    # relaxed (layout/gate-order bugs would produce O(0.3+) differences).
    y_ref = reference_forward(x, raw, hidden_size, num_layers)
    err = float(jnp.max(jnp.abs(y - y_ref)))
    assert err < 1e-1, f"max abs diff vs f32 reference too large: {err}"

    print("KERNEL_OK")
</pallas_src>

<mosaic_0001>
module attributes {stable_mosaic.version = 11 : i64} {
  func.func @kernel(%arg0: memref<16x16xf32, #tpu.memory_space<vmem>>, %arg1: memref<16x32xbf16, #tpu.memory_space<vmem>>, %arg2: memref<1x32xf32, #tpu.memory_space<vmem>>, %arg3: memref<32x256xbf16, #tpu.memory_space<vmem>>, %arg4: memref<32x256xf32, #tpu.memory_space<vmem>>, %arg5: memref<1x128xf32, #tpu.memory_space<vmem>>, %arg6: memref<1x128xf32, #tpu.memory_space<vmem>>, %arg7: memref<64x256xbf16, #tpu.memory_space<vmem>>, %arg8: memref<32x256xf32, #tpu.memory_space<vmem>>, %arg9: memref<1x128xf32, #tpu.memory_space<vmem>>, %arg10: memref<1x128xf32, #tpu.memory_space<vmem>>, %arg11: memref<64x10xbf16, #tpu.memory_space<vmem>>, %arg12: memref<1x10xf32, #tpu.memory_space<vmem>>, %arg13: memref<16x10xf32, #tpu.memory_space<vmem>>) attributes {dimension_semantics = [], scalar_prefetch = 0 : i64, scratch_operands = 0 : i64, tpu.core_type = #tpu.core_type<tc>} {
    %0 = tpu.iota {dimensions = array<i32: 0>} : vector<4x128xi32>
    %c2_i32 = arith.constant 2 : i32
    %1 = vector.broadcast %c2_i32 : i32 to vector<4x128xi32>
    %2 = arith.cmpi slt, %0, %1 : vector<4x128xi32>
    %c0 = arith.constant 0 : index
    %c0_0 = arith.constant 0 : index
    %3 = vector.load %arg0[%c0, %c0_0] : memref<16x16xf32, #tpu.memory_space<vmem>>, vector<16x16xf32>
    %4 = arith.truncf %3 : vector<16x16xf32> to vector<16x16xbf16>
    %c0_1 = arith.constant 0 : index
    %c0_2 = arith.constant 0 : index
    %5 = vector.load %arg1[%c0_1, %c0_2] : memref<16x32xbf16, #tpu.memory_space<vmem>>, vector<16x32xbf16>
    %cst = arith.constant dense<0.000000e+00> : vector<16x32xf32>
    %6 = tpu.matmul %4, %5, %cst {dimension_numbers = #tpu.dot_dimension_numbers<[1], [0], [0], [1], [0, 0, 1, 1], [], []>} : vector<16x16xbf16>, vector<16x32xbf16>, vector<16x32xf32> -> vector<16x32xf32>
    %c0_3 = arith.constant 0 : index
    %c0_4 = arith.constant 0 : index
    %7 = vector.load %arg2[%c0_3, %c0_4] : memref<1x32xf32, #tpu.memory_space<vmem>>, vector<1x32xf32>
    %8 = vector.broadcast %7 : vector<1x32xf32> to vector<16x32xf32>
    %9 = arith.addf %6, %8 : vector<16x32xf32>
    %cst_5 = arith.constant 0.000000e+00 : f32
    %10 = vector.broadcast %cst_5 : f32 to vector<16x32xf32>
    %11 = arith.maximumf %9, %10 : vector<16x32xf32>
    %12 = arith.truncf %11 : vector<16x32xf32> to vector<16x32xbf16>
    %c0_6 = arith.constant 0 : index
    %c0_7 = arith.constant 0 : index
    %13 = vector.load %arg3[%c0_6, %c0_7] : memref<32x256xbf16, #tpu.memory_space<vmem>>, vector<32x256xbf16>
    %cst_8 = arith.constant dense<0.000000e+00> : vector<16x256xf32>
    %14 = tpu.matmul %12, %13, %cst_8 {dimension_numbers = #tpu.dot_dimension_numbers<[1], [0], [0], [1], [0, 0, 1, 1], [], []>} : vector<16x32xbf16>, vector<32x256xbf16>, vector<16x256xf32> -> vector<16x256xf32>
    %15 = vector.extract_strided_slice %14 {offsets = [0, 0], sizes = [16, 128], strides = [1, 1]} : vector<16x256xf32> to vector<16x128xf32>
    %c0_9 = arith.constant 0 : index
    %c0_10 = arith.constant 0 : index
    %16 = vector.load %arg5[%c0_9, %c0_10] : memref<1x128xf32, #tpu.memory_space<vmem>>, vector<1x128xf32>
    %17 = vector.broadcast %16 : vector<1x128xf32> to vector<16x128xf32>
    %18 = arith.addf %15, %17 : vector<16x128xf32>
    %19 = vector.shape_cast %18 : vector<16x128xf32> to vector<8x2x128xf32>
    %20 = vector.extract_strided_slice %14 {offsets = [0, 128], sizes = [16, 128], strides = [1, 1]} : vector<16x256xf32> to vector<16x128xf32>
    %c0_11 = arith.constant 0 : index
    %c0_12 = arith.constant 0 : index
    %21 = vector.load %arg6[%c0_11, %c0_12] : memref<1x128xf32, #tpu.memory_space<vmem>>, vector<1x128xf32>
    %22 = vector.broadcast %21 : vector<1x128xf32> to vector<16x128xf32>
    %23 = arith.addf %20, %22 : vector<16x128xf32>
    %24 = vector.shape_cast %23 : vector<16x128xf32> to vector<8x2x128xf32>
    %25 = vector.extract_strided_slice %19 {offsets = [0, 0, 0], sizes = [1, 2, 128], strides = [1, 1, 1]} : vector<8x2x128xf32> to vector<1x2x128xf32>
    %26 = vector.shape_cast %25 : vector<1x2x128xf32> to vector<2x128xf32>
    %27 = vector.extract_strided_slice %24 {offsets = [7, 0, 0], sizes = [1, 2, 128], strides = [1, 1, 1]} : vector<8x2x128xf32> to vector<1x2x128xf32>
    %28 = vector.shape_cast %27 : vector<1x2x128xf32> to vector<2x128xf32>
    %29 = tpu.concatenate %26, %28 in 0 : vector<2x128xf32>, vector<2x128xf32> -> vector<4x128xf32>
    %30 = vector.extract_strided_slice %19 {offsets = [1, 0, 0], sizes = [1, 2, 128], strides = [1, 1, 1]} : vector<8x2x128xf32> to vector<1x2x128xf32>
    %31 = vector.shape_cast %30 : vector<1x2x128xf32> to vector<2x128xf32>
    %32 = vector.extract_strided_slice %24 {offsets = [6, 0, 0], sizes = [1, 2, 128], strides = [1, 1, 1]} : vector<8x2x128xf32> to vector<1x2x128xf32>
    %33 = vector.shape_cast %32 : vector<1x2x128xf32> to vector<2x128xf32>
    %34 = tpu.concatenate %31, %33 in 0 : vector<2x128xf32>, vector<2x128xf32> -> vector<4x128xf32>
    %35 = vector.extract_strided_slice %19 {offsets = [2, 0, 0], sizes = [1, 2, 128], strides = [1, 1, 1]} : vector<8x2x128xf32> to vector<1x2x128xf32>
    %36 = vector.shape_cast %35 : vector<1x2x128xf32> to vector<2x128xf32>
    %37 = vector.extract_strided_slice %24 {offsets = [5, 0, 0], sizes = [1, 2, 128], strides = [1, 1, 1]} : vector<8x2x128xf32> to vector<1x2x128xf32>
    %38 = vector.shape_cast %37 : vector<1x2x128xf32> to vector<2x128xf32>
    %39 = tpu.concatenate %36, %38 in 0 : vector<2x128xf32>, vector<2x128xf32> -> vector<4x128xf32>
    %40 = vector.extract_strided_slice %19 {offsets = [3, 0, 0], sizes = [1, 2, 128], strides = [1, 1, 1]} : vector<8x2x128xf32> to vector<1x2x128xf32>
    %41 = vector.shape_cast %40 : vector<1x2x128xf32> to vector<2x128xf32>
    %42 = vector.extract_strided_slice %24 {offsets = [4, 0, 0], sizes = [1, 2, 128], strides = [1, 1, 1]} : vector<8x2x128xf32> to vector<1x2x128xf32>
    %43 = vector.shape_cast %42 : vector<1x2x128xf32> to vector<2x128xf32>
    %44 = tpu.concatenate %41, %43 in 0 : vector<2x128xf32>, vector<2x128xf32> -> vector<4x128xf32>
    %45 = vector.extract_strided_slice %19 {offsets = [4, 0, 0], sizes = [1, 2, 128], strides = [1, 1, 1]} : vector<8x2x128xf32> to vector<1x2x128xf32>
    %46 = vector.shape_cast %45 : vector<1x2x128xf32> to vector<2x128xf32>
    %47 = vector.extract_strided_slice %24 {offsets = [3, 0, 0], sizes = [1, 2, 128], strides = [1, 1, 1]} : vector<8x2x128xf32> to vector<1x2x128xf32>
    %48 = vector.shape_cast %47 : vector<1x2x128xf32> to vector<2x128xf32>
    %49 = tpu.concatenate %46, %48 in 0 : vector<2x128xf32>, vector<2x128xf32> -> vector<4x128xf32>
    %50 = vector.extract_strided_slice %19 {offsets = [5, 0, 0], sizes = [1, 2, 128], strides = [1, 1, 1]} : vector<8x2x128xf32> to vector<1x2x128xf32>
    %51 = vector.shape_cast %50 : vector<1x2x128xf32> to vector<2x128xf32>
    %52 = vector.extract_strided_slice %24 {offsets = [2, 0, 0], sizes = [1, 2, 128], strides = [1, 1, 1]} : vector<8x2x128xf32> to vector<1x2x128xf32>
    %53 = vector.shape_cast %52 : vector<1x2x128xf32> to vector<2x128xf32>
    %54 = tpu.concatenate %51, %53 in 0 : vector<2x128xf32>, vector<2x128xf32> -> vector<4x128xf32>
    %55 = vector.extract_strided_slice %19 {offsets = [6, 0, 0], sizes = [1, 2, 128], strides = [1, 1, 1]} : vector<8x2x128xf32> to vector<1x2x128xf32>
    %56 = vector.shape_cast %55 : vector<1x2x128xf32> to vector<2x128xf32>
    %57 = vector.extract_strided_slice %24 {offsets = [1, 0, 0], sizes = [1, 2, 128], strides = [1, 1, 1]} : vector<8x2x128xf32> to vector<1x2x128xf32>
    %58 = vector.shape_cast %57 : vector<1x2x128xf32> to vector<2x128xf32>
    %59 = tpu.concatenate %56, %58 in 0 : vector<2x128xf32>, vector<2x128xf32> -> vector<4x128xf32>
    %60 = vector.extract_strided_slice %19 {offsets = [7, 0, 0], sizes = [1, 2, 128], strides = [1, 1, 1]} : vector<8x2x128xf32> to vector<1x2x128xf32>
    %61 = vector.shape_cast %60 : vector<1x2x128xf32> to vector<2x128xf32>
    %62 = vector.extract_strided_slice %24 {offsets = [0, 0, 0], sizes = [1, 2, 128], strides = [1, 1, 1]} : vector<8x2x128xf32> to vector<1x2x128xf32>
    %63 = vector.shape_cast %62 : vector<1x2x128xf32> to vector<2x128xf32>
    %64 = tpu.concatenate %61, %63 in 0 : vector<2x128xf32>, vector<2x128xf32> -> vector<4x128xf32>
    %c0_13 = arith.constant 0 : index
    %c0_14 = arith.constant 0 : index
    %65 = vector.load %arg4[%c0_13, %c0_14] : memref<32x256xf32, #tpu.memory_space<vmem>>, vector<32x256xf32>
    %cst_15 = arith.constant 0.000000e+00 : f32
    %66 = vector.broadcast %cst_15 : f32 to vector<4x32xf32>
    %cst_16 = arith.constant 0.000000e+00 : f32
    %67 = vector.broadcast %cst_16 : f32 to vector<4x32xf32>
    %cst_17 = arith.constant dense<0.000000e+00> : vector<4x256xf32>
    %68 = tpu.matmul %66, %65, %cst_17 {dimension_numbers = #tpu.dot_dimension_numbers<[1], [0], [0], [1], [0, 0, 1, 1], [], []>} : vector<4x32xf32>, vector<32x256xf32>, vector<4x256xf32> -> vector<4x256xf32>
    %69 = vector.extract_strided_slice %68 {offsets = [0, 0], sizes = [4, 128], strides = [1, 1]} : vector<4x256xf32> to vector<4x128xf32>
    %70 = vector.extract_strided_slice %68 {offsets = [0, 128], sizes = [4, 128], strides = [1, 1]} : vector<4x256xf32> to vector<4x128xf32>
    %71 = arith.select %2, %69, %70 : vector<4x128xi1>, vector<4x128xf32>
    %72 = arith.addf %29, %71 : vector<4x128xf32>
    %cst_18 = arith.constant 5.000000e-01 : f32
    %73 = vector.broadcast %cst_18 : f32 to vector<4x128xf32>
    %74 = arith.mulf %73, %72 : vector<4x128xf32>
    %75 = math.tanh %74 : vector<4x128xf32>
    %cst_19 = arith.constant 5.000000e-01 : f32
    %76 = vector.broadcast %cst_19 : f32 to vector<4x128xf32>
    %77 = arith.mulf %76, %75 : vector<4x128xf32>
    %cst_20 = arith.constant 5.000000e-01 : f32
    %78 = vector.broadcast %cst_20 : f32 to vector<4x128xf32>
    %79 = arith.addf %77, %78 : vector<4x128xf32>
    %80 = math.tanh %72 : vector<4x128xf32>
    %81 = vector.extract_strided_slice %79 {offsets = [0, 32], sizes = [4, 32], strides = [1, 1]} : vector<4x128xf32> to vector<4x32xf32>
    %82 = arith.mulf %81, %67 : vector<4x32xf32>
    %83 = vector.extract_strided_slice %79 {offsets = [0, 0], sizes = [4, 32], strides = [1, 1]} : vector<4x128xf32> to vector<4x32xf32>
    %84 = vector.extract_strided_slice %80 {offsets = [0, 96], sizes = [4, 32], strides = [1, 1]} : vector<4x128xf32> to vector<4x32xf32>
    %85 = arith.mulf %83, %84 : vector<4x32xf32>
    %86 = arith.addf %82, %85 : vector<4x32xf32>
    %87 = vector.extract_strided_slice %79 {offsets = [0, 64], sizes = [4, 32], strides = [1, 1]} : vector<4x128xf32> to vector<4x32xf32>
    %88 = math.tanh %86 : vector<4x32xf32>
    %89 = arith.mulf %87, %88 : vector<4x32xf32>
    %cst_21 = arith.constant dense<0.000000e+00> : vector<4x256xf32>
    %90 = tpu.matmul %89, %65, %cst_21 {dimension_numbers = #tpu.dot_dimension_numbers<[1], [0], [0], [1], [0, 0, 1, 1], [], []>} : vector<4x32xf32>, vector<32x256xf32>, vector<4x256xf32> -> vector<4x256xf32>
    %91 = vector.extract_strided_slice %90 {offsets = [0, 0], sizes = [4, 128], strides = [1, 1]} : vector<4x256xf32> to vector<4x128xf32>
    %92 = vector.extract_strided_slice %90 {offsets = [0, 128], sizes = [4, 128], strides = [1, 1]} : vector<4x256xf32> to vector<4x128xf32>
    %93 = arith.select %2, %91, %92 : vector<4x128xi1>, vector<4x128xf32>
    %94 = arith.addf %34, %93 : vector<4x128xf32>
    %cst_22 = arith.constant 5.000000e-01 : f32
    %95 = vector.broadcast %cst_22 : f32 to vector<4x128xf32>
    %96 = arith.mulf %95, %94 : vector<4x128xf32>
    %97 = math.tanh %96 : vector<4x128xf32>
    %cst_23 = arith.constant 5.000000e-01 : f32
    %98 = vector.broadcast %cst_23 : f32 to vector<4x128xf32>
    %99 = arith.mulf %98, %97 : vector<4x128xf32>
    %cst_24 = arith.constant 5.000000e-01 : f32
    %100 = vector.broadcast %cst_24 : f32 to vector<4x128xf32>
    %101 = arith.addf %99, %100 : vector<4x128xf32>
    %102 = math.tanh %94 : vector<4x128xf32>
    %103 = vector.extract_strided_slice %101 {offsets = [0, 32], sizes = [4, 32], strides = [1, 1]} : vector<4x128xf32> to vector<4x32xf32>
    %104 = arith.mulf %103, %86 : vector<4x32xf32>
    %105 = vector.extract_strided_slice %101 {offsets = [0, 0], sizes = [4, 32], strides = [1, 1]} : vector<4x128xf32> to vector<4x32xf32>
    %106 = vector.extract_strided_slice %102 {offsets = [0, 96], sizes = [4, 32], strides = [1, 1]} : vector<4x128xf32> to vector<4x32xf32>
    %107 = arith.mulf %105, %106 : vector<4x32xf32>
    %108 = arith.addf %104, %107 : vector<4x32xf32>
    %109 = vector.extract_strided_slice %101 {offsets = [0, 64], sizes = [4, 32], strides = [1, 1]} : vector<4x128xf32> to vector<4x32xf32>
    %110 = math.tanh %108 : vector<4x32xf32>
    %111 = arith.mulf %109, %110 : vector<4x32xf32>
    %cst_25 = arith.constant dense<0.000000e+00> : vector<4x256xf32>
    %112 = tpu.matmul %111, %65, %cst_25 {dimension_numbers = #tpu.dot_dimension_numbers<[1], [0], [0], [1], [0, 0, 1, 1], [], []>} : vector<4x32xf32>, vector<32x256xf32>, vector<4x256xf32> -> vector<4x256xf32>
    %113 = vector.extract_strided_slice %112 {offsets = [0, 0], sizes = [4, 128], strides = [1, 1]} : vector<4x256xf32> to vector<4x128xf32>
    %114 = vector.extract_strided_slice %112 {offsets = [0, 128], sizes = [4, 128], strides = [1, 1]} : vector<4x256xf32> to vector<4x128xf32>
    %115 = arith.select %2, %113, %114 : vector<4x128xi1>, vector<4x128xf32>
    %116 = arith.addf %39, %115 : vector<4x128xf32>
    %cst_26 = arith.constant 5.000000e-01 : f32
    %117 = vector.broadcast %cst_26 : f32 to vector<4x128xf32>
    %118 = arith.mulf %117, %116 : vector<4x128xf32>
    %119 = math.tanh %118 : vector<4x128xf32>
    %cst_27 = arith.constant 5.000000e-01 : f32
    %120 = vector.broadcast %cst_27 : f32 to vector<4x128xf32>
    %121 = arith.mulf %120, %119 : vector<4x128xf32>
    %cst_28 = arith.constant 5.000000e-01 : f32
    %122 = vector.broadcast %cst_28 : f32 to vector<4x128xf32>
    %123 = arith.addf %121, %122 : vector<4x128xf32>
    %124 = math.tanh %116 : vector<4x128xf32>
    %125 = vector.extract_strided_slice %123 {offsets = [0, 32], sizes = [4, 32], strides = [1, 1]} : vector<4x128xf32> to vector<4x32xf32>
    %126 = arith.mulf %125, %108 : vector<4x32xf32>
    %127 = vector.extract_strided_slice %123 {offsets = [0, 0], sizes = [4, 32], strides = [1, 1]} : vector<4x128xf32> to vector<4x32xf32>
    %128 = vector.extract_strided_slice %124 {offsets = [0, 96], sizes = [4, 32], strides = [1, 1]} : vector<4x128xf32> to vector<4x32xf32>
    %129 = arith.mulf %127, %128 : vector<4x32xf32>
    %130 = arith.addf %126, %129 : vector<4x32xf32>
    %131 = vector.extract_strided_slice %123 {offsets = [0, 64], sizes = [4, 32], strides = [1, 1]} : vector<4x128xf32> to vector<4x32xf32>
    %132 = math.tanh %130 : vector<4x32xf32>
    %133 = arith.mulf %131, %132 : vector<4x32xf32>
    %cst_29 = arith.constant dense<0.000000e+00> : vector<4x256xf32>
    %134 = tpu.matmul %133, %65, %cst_29 {dimension_numbers = #tpu.dot_dimension_numbers<[1], [0], [0], [1], [0, 0, 1, 1], [], []>} : vector<4x32xf32>, vector<32x256xf32>, vector<4x256xf32> -> vector<4x256xf32>
    %135 = vector.extract_strided_slice %134 {offsets = [0, 0], sizes = [4, 128], strides = [1, 1]} : vector<4x256xf32> to vector<4x128xf32>
    %136 = vector.extract_strided_slice %134 {offsets = [0, 128], sizes = [4, 128], strides = [1, 1]} : vector<4x256xf32> to vector<4x128xf32>
    %137 = arith.select %2, %135, %136 : vector<4x128xi1>, vector<4x128xf32>
    %138 = arith.addf %44, %137 : vector<4x128xf32>
    %cst_30 = arith.constant 5.000000e-01 : f32
    %139 = vector.broadcast %cst_30 : f32 to vector<4x128xf32>
    %140 = arith.mulf %139, %138 : vector<4x128xf32>
    %141 = math.tanh %140 : vector<4x128xf32>
    %cst_31 = arith.constant 5.000000e-01 : f32
    %142 = vector.broadcast %cst_31 : f32 to vector<4x128xf32>
    %143 = arith.mulf %142, %141 : vector<4x128xf32>
    %cst_32 = arith.constant 5.000000e-01 : f32
    %144 = vector.broadcast %cst_32 : f32 to vector<4x128xf32>
    %145 = arith.addf %143, %144 : vector<4x128xf32>
    %146 = math.tanh %138 : vector<4x128xf32>
    %147 = vector.extract_strided_slice %145 {offsets = [0, 32], sizes = [4, 32], strides = [1, 1]} : vector<4x128xf32> to vector<4x32xf32>
    %148 = arith.mulf %147, %130 : vector<4x32xf32>
    %149 = vector.extract_strided_slice %145 {offsets = [0, 0], sizes = [4, 32], strides = [1, 1]} : vector<4x128xf32> to vector<4x32xf32>
    %150 = vector.extract_strided_slice %146 {offsets = [0, 96], sizes = [4, 32], strides = [1, 1]} : vector<4x128xf32> to vector<4x32xf32>
    %151 = arith.mulf %149, %150 : vector<4x32xf32>
    %152 = arith.addf %148, %151 : vector<4x32xf32>
    %153 = vector.extract_strided_slice %145 {offsets = [0, 64], sizes = [4, 32], strides = [1, 1]} : vector<4x128xf32> to vector<4x32xf32>
    %154 = math.tanh %152 : vector<4x32xf32>
    %155 = arith.mulf %153, %154 : vector<4x32xf32>
    %cst_33 = arith.constant dense<0.000000e+00> : vector<4x256xf32>
    %156 = tpu.matmul %155, %65, %cst_33 {dimension_numbers = #tpu.dot_dimension_numbers<[1], [0], [0], [1], [0, 0, 1, 1], [], []>} : vector<4x32xf32>, vector<32x256xf32>, vector<4x256xf32> -> vector<4x256xf32>
    %157 = vector.extract_strided_slice %156 {offsets = [0, 0], sizes = [4, 128], strides = [1, 1]} : vector<4x256xf32> to vector<4x128xf32>
    %158 = vector.extract_strided_slice %156 {offsets = [0, 128], sizes = [4, 128], strides = [1, 1]} : vector<4x256xf32> to vector<4x128xf32>
    %159 = arith.select %2, %157, %158 : vector<4x128xi1>, vector<4x128xf32>
    %160 = arith.addf %49, %159 : vector<4x128xf32>
    %cst_34 = arith.constant 5.000000e-01 : f32
    %161 = vector.broadcast %cst_34 : f32 to vector<4x128xf32>
    %162 = arith.mulf %161, %160 : vector<4x128xf32>
    %163 = math.tanh %162 : vector<4x128xf32>
    %cst_35 = arith.constant 5.000000e-01 : f32
    %164 = vector.broadcast %cst_35 : f32 to vector<4x128xf32>
    %165 = arith.mulf %164, %163 : vector<4x128xf32>
    %cst_36 = arith.constant 5.000000e-01 : f32
    %166 = vector.broadcast %cst_36 : f32 to vector<4x128xf32>
    %167 = arith.addf %165, %166 : vector<4x128xf32>
    %168 = math.tanh %160 : vector<4x128xf32>
    %169 = vector.extract_strided_slice %167 {offsets = [0, 32], sizes = [4, 32], strides = [1, 1]} : vector<4x128xf32> to vector<4x32xf32>
    %170 = arith.mulf %169, %152 : vector<4x32xf32>
    %171 = vector.extract_strided_slice %167 {offsets = [0, 0], sizes = [4, 32], strides = [1, 1]} : vector<4x128xf32> to vector<4x32xf32>
    %172 = vector.extract_strided_slice %168 {offsets = [0, 96], sizes = [4, 32], strides = [1, 1]} : vector<4x128xf32> to vector<4x32xf32>
    %173 = arith.mulf %171, %172 : vector<4x32xf32>
    %174 = arith.addf %170, %173 : vector<4x32xf32>
    %175 = vector.extract_strided_slice %167 {offsets = [0, 64], sizes = [4, 32], strides = [1, 1]} : vector<4x128xf32> to vector<4x32xf32>
    %176 = math.tanh %174 : vector<4x32xf32>
    %177 = arith.mulf %175, %176 : vector<4x32xf32>
    %cst_37 = arith.constant dense<0.000000e+00> : vector<4x256xf32>
    %178 = tpu.matmul %177, %65, %cst_37 {dimension_numbers = #tpu.dot_dimension_numbers<[1], [0], [0], [1], [0, 0, 1, 1], [], []>} : vector<4x32xf32>, vector<32x256xf32>, vector<4x256xf32> -> vector<4x256xf32>
    %179 = vector.extract_strided_slice %178 {offsets = [0, 0], sizes = [4, 128], strides = [1, 1]} : vector<4x256xf32> to vector<4x128xf32>
    %180 = vector.extract_strided_slice %178 {offsets = [0, 128], sizes = [4, 128], strides = [1, 1]} : vector<4x256xf32> to vector<4x128xf32>
    %181 = arith.select %2, %179, %180 : vector<4x128xi1>, vector<4x128xf32>
    %182 = arith.addf %54, %181 : vector<4x128xf32>
    %cst_38 = arith.constant 5.000000e-01 : f32
    %183 = vector.broadcast %cst_38 : f32 to vector<4x128xf32>
    %184 = arith.mulf %183, %182 : vector<4x128xf32>
    %185 = math.tanh %184 : vector<4x128xf32>
    %cst_39 = arith.constant 5.000000e-01 : f32
    %186 = vector.broadcast %cst_39 : f32 to vector<4x128xf32>
    %187 = arith.mulf %186, %185 : vector<4x128xf32>
    %cst_40 = arith.constant 5.000000e-01 : f32
    %188 = vector.broadcast %cst_40 : f32 to vector<4x128xf32>
    %189 = arith.addf %187, %188 : vector<4x128xf32>
    %190 = math.tanh %182 : vector<4x128xf32>
    %191 = vector.extract_strided_slice %189 {offsets = [0, 32], sizes = [4, 32], strides = [1, 1]} : vector<4x128xf32> to vector<4x32xf32>
    %192 = arith.mulf %191, %174 : vector<4x32xf32>
    %193 = vector.extract_strided_slice %189 {offsets = [0, 0], sizes = [4, 32], strides = [1, 1]} : vector<4x128xf32> to vector<4x32xf32>
    %194 = vector.extract_strided_slice %190 {offsets = [0, 96], sizes = [4, 32], strides = [1, 1]} : vector<4x128xf32> to vector<4x32xf32>
    %195 = arith.mulf %193, %194 : vector<4x32xf32>
    %196 = arith.addf %192, %195 : vector<4x32xf32>
    %197 = vector.extract_strided_slice %189 {offsets = [0, 64], sizes = [4, 32], strides = [1, 1]} : vector<4x128xf32> to vector<4x32xf32>
    %198 = math.tanh %196 : vector<4x32xf32>
    %199 = arith.mulf %197, %198 : vector<4x32xf32>
    %cst_41 = arith.constant dense<0.000000e+00> : vector<4x256xf32>
    %200 = tpu.matmul %199, %65, %cst_41 {dimension_numbers = #tpu.dot_dimension_numbers<[1], [0], [0], [1], [0, 0, 1, 1], [], []>} : vector<4x32xf32>, vector<32x256xf32>, vector<4x256xf32> -> vector<4x256xf32>
    %201 = vector.extract_strided_slice %200 {offsets = [0, 0], sizes = [4, 128], strides = [1, 1]} : vector<4x256xf32> to vector<4x128xf32>
    %202 = vector.extract_strided_slice %200 {offsets = [0, 128], sizes = [4, 128], strides = [1, 1]} : vector<4x256xf32> to vector<4x128xf32>
    %203 = arith.select %2, %201, %202 : vector<4x128xi1>, vector<4x128xf32>
    %204 = arith.addf %59, %203 : vector<4x128xf32>
    %cst_42 = arith.constant 5.000000e-01 : f32
    %205 = vector.broadcast %cst_42 : f32 to vector<4x128xf32>
    %206 = arith.mulf %205, %204 : vector<4x128xf32>
    %207 = math.tanh %206 : vector<4x128xf32>
    %cst_43 = arith.constant 5.000000e-01 : f32
    %208 = vector.broadcast %cst_43 : f32 to vector<4x128xf32>
    %209 = arith.mulf %208, %207 : vector<4x128xf32>
    %cst_44 = arith.constant 5.000000e-01 : f32
    %210 = vector.broadcast %cst_44 : f32 to vector<4x128xf32>
    %211 = arith.addf %209, %210 : vector<4x128xf32>
    %212 = math.tanh %204 : vector<4x128xf32>
    %213 = vector.extract_strided_slice %211 {offsets = [0, 32], sizes = [4, 32], strides = [1, 1]} : vector<4x128xf32> to vector<4x32xf32>
    %214 = arith.mulf %213, %196 : vector<4x32xf32>
    %215 = vector.extract_strided_slice %211 {offsets = [0, 0], sizes = [4, 32], strides = [1, 1]} : vector<4x128xf32> to vector<4x32xf32>
    %216 = vector.extract_strided_slice %212 {offsets = [0, 96], sizes = [4, 32], strides = [1, 1]} : vector<4x128xf32> to vector<4x32xf32>
    %217 = arith.mulf %215, %216 : vector<4x32xf32>
    %218 = arith.addf %214, %217 : vector<4x32xf32>
    %219 = vector.extract_strided_slice %211 {offsets = [0, 64], sizes = [4, 32], strides = [1, 1]} : vector<4x128xf32> to vector<4x32xf32>
    %220 = math.tanh %218 : vector<4x32xf32>
    %221 = arith.mulf %219, %220 : vector<4x32xf32>
    %cst_45 = arith.constant dense<0.000000e+00> : vector<4x256xf32>
    %222 = tpu.matmul %221, %65, %cst_45 {dimension_numbers = #tpu.dot_dimension_numbers<[1], [0], [0], [1], [0, 0, 1, 1], [], []>} : vector<4x32xf32>, vector<32x256xf32>, vector<4x256xf32> -> vector<4x256xf32>
    %223 = vector.extract_strided_slice %222 {offsets = [0, 0], sizes = [4, 128], strides = [1, 1]} : vector<4x256xf32> to vector<4x128xf32>
    %224 = vector.extract_strided_slice %222 {offsets = [0, 128], sizes = [4, 128], strides = [1, 1]} : vector<4x256xf32> to vector<4x128xf32>
    %225 = arith.select %2, %223, %224 : vector<4x128xi1>, vector<4x128xf32>
    %226 = arith.addf %64, %225 : vector<4x128xf32>
    %cst_46 = arith.constant 5.000000e-01 : f32
    %227 = vector.broadcast %cst_46 : f32 to vector<4x128xf32>
    %228 = arith.mulf %227, %226 : vector<4x128xf32>
    %229 = math.tanh %228 : vector<4x128xf32>
    %cst_47 = arith.constant 5.000000e-01 : f32
    %230 = vector.broadcast %cst_47 : f32 to vector<4x128xf32>
    %231 = arith.mulf %230, %229 : vector<4x128xf32>
    %cst_48 = arith.constant 5.000000e-01 : f32
    %232 = vector.broadcast %cst_48 : f32 to vector<4x128xf32>
    %233 = arith.addf %231, %232 : vector<4x128xf32>
    %234 = math.tanh %226 : vector<4x128xf32>
    %235 = vector.extract_strided_slice %233 {offsets = [0, 32], sizes = [4, 32], strides = [1, 1]} : vector<4x128xf32> to vector<4x32xf32>
    %236 = arith.mulf %235, %218 : vector<4x32xf32>
    %237 = vector.extract_strided_slice %233 {offsets = [0, 0], sizes = [4, 32], strides = [1, 1]} : vector<4x128xf32> to vector<4x32xf32>
    %238 = vector.extract_strided_slice %234 {offsets = [0, 96], sizes = [4, 32], strides = [1, 1]} : vector<4x128xf32> to vector<4x32xf32>
    %239 = arith.mulf %237, %238 : vector<4x32xf32>
    %240 = arith.addf %236, %239 : vector<4x32xf32>
    %241 = vector.extract_strided_slice %233 {offsets = [0, 64], sizes = [4, 32], strides = [1, 1]} : vector<4x128xf32> to vector<4x32xf32>
    %242 = math.tanh %240 : vector<4x32xf32>
    %243 = arith.mulf %241, %242 : vector<4x32xf32>
    %244 = vector.extract_strided_slice %89 {offsets = [0, 0], sizes = [2, 32], strides = [1, 1]} : vector<4x32xf32> to vector<2x32xf32>
    %245 = vector.extract_strided_slice %243 {offsets = [2, 0], sizes = [2, 32], strides = [1, 1]} : vector<4x32xf32> to vector<2x32xf32>
    %246 = tpu.concatenate %244, %245 in 1 : vector<2x32xf32>, vector<2x32xf32> -> vector<2x64xf32>
    %247 = vector.extract_strided_slice %111 {offsets = [0, 0], sizes = [2, 32], strides = [1, 1]} : vector<4x32xf32> to vector<2x32xf32>
    %248 = vector.extract_strided_slice %221 {offsets = [2, 0], sizes = [2, 32], strides = [1, 1]} : vector<4x32xf32> to vector<2x32xf32>
    %249 = tpu.concatenate %247, %248 in 1 : vector<2x32xf32>, vector<2x32xf32> -> vector<2x64xf32>
    %250 = vector.extract_strided_slice %133 {offsets = [0, 0], sizes = [2, 32], strides = [1, 1]} : vector<4x32xf32> to vector<2x32xf32>
    %251 = vector.extract_strided_slice %199 {offsets = [2, 0], sizes = [2, 32], strides = [1, 1]} : vector<4x32xf32> to vector<2x32xf32>
    %252 = tpu.concatenate %250, %251 in 1 : vector<2x32xf32>, vector<2x32xf32> -> vector<2x64xf32>
    %253 = vector.extract_strided_slice %155 {offsets = [0, 0], sizes = [2, 32], strides = [1, 1]} : vector<4x32xf32> to vector<2x32xf32>
    %254 = vector.extract_strided_slice %177 {offsets = [2, 0], sizes = [2, 32], strides = [1, 1]} : vector<4x32xf32> to vector<2x32xf32>
    %255 = tpu.concatenate %253, %254 in 1 : vector<2x32xf32>, vector<2x32xf32> -> vector<2x64xf32>
    %256 = vector.extract_strided_slice %177 {offsets = [0, 0], sizes = [2, 32], strides = [1, 1]} : vector<4x32xf32> to vector<2x32xf32>
    %257 = vector.extract_strided_slice %155 {offsets = [2, 0], sizes = [2, 32], strides = [1, 1]} : vector<4x32xf32> to vector<2x32xf32>
    %258 = tpu.concatenate %256, %257 in 1 : vector<2x32xf32>, vector<2x32xf32> -> vector<2x64xf32>
    %259 = vector.extract_strided_slice %199 {offsets = [0, 0], sizes = [2, 32], strides = [1, 1]} : vector<4x32xf32> to vector<2x32xf32>
    %260 = vector.extract_strided_slice %133 {offsets = [2, 0], sizes = [2, 32], strides = [1, 1]} : vector<4x32xf32> to vector<2x32xf32>
    %261 = tpu.concatenate %259, %260 in 1 : vector<2x32xf32>, vector<2x32xf32> -> vector<2x64xf32>
    %262 = vector.extract_strided_slice %221 {offsets = [0, 0], sizes = [2, 32], strides = [1, 1]} : vector<4x32xf32> to vector<2x32xf32>
    %263 = vector.extract_strided_slice %111 {offsets = [2, 0], sizes = [2, 32], strides = [1, 1]} : vector<4x32xf32> to vector<2x32xf32>
    %264 = tpu.concatenate %262, %263 in 1 : vector<2x32xf32>, vector<2x32xf32> -> vector<2x64xf32>
    %265 = vector.extract_strided_slice %243 {offsets = [0, 0], sizes = [2, 32], strides = [1, 1]} : vector<4x32xf32> to vector<2x32xf32>
    %266 = vector.extract_strided_slice %89 {offsets = [2, 0], sizes = [2, 32], strides = [1, 1]} : vector<4x32xf32> to vector<2x32xf32>
    %267 = tpu.concatenate %265, %266 in 1 : vector<2x32xf32>, vector<2x32xf32> -> vector<2x64xf32>
    %268 = tpu.concatenate %246, %249, %252, %255, %258, %261, %264, %267 in 0 : vector<2x64xf32>, vector<2x64xf32>, vector<2x64xf32>, vector<2x64xf32>, vector<2x64xf32>, vector<2x64xf32>, vector<2x64xf32>, vector<2x64xf32> -> vector<16x64xf32>
    %269 = arith.truncf %268 : vector<16x64xf32> to vector<16x64xbf16>
    %c0_49 = arith.constant 0 : index
    %c0_50 = arith.constant 0 : index
    %270 = vector.load %arg7[%c0_49, %c0_50] : memref<64x256xbf16, #tpu.memory_space<vmem>>, vector<64x256xbf16>
    %cst_51 = arith.constant dense<0.000000e+00> : vector<16x256xf32>
    %271 = tpu.matmul %269, %270, %cst_51 {dimension_numbers = #tpu.dot_dimension_numbers<[1], [0], [0], [1], [0, 0, 1, 1], [], []>} : vector<16x64xbf16>, vector<64x256xbf16>, vector<16x256xf32> -> vector<16x256xf32>
    %272 = vector.extract_strided_slice %271 {offsets = [0, 0], sizes = [16, 128], strides = [1, 1]} : vector<16x256xf32> to vector<16x128xf32>
    %c0_52 = arith.constant 0 : index
    %c0_53 = arith.constant 0 : index
    %273 = vector.load %arg9[%c0_52, %c0_53] : memref<1x128xf32, #tpu.memory_space<vmem>>, vector<1x128xf32>
    %274 = vector.broadcast %273 : vector<1x128xf32> to vector<16x128xf32>
    %275 = arith.addf %272, %274 : vector<16x128xf32>
    %276 = vector.shape_cast %275 : vector<16x128xf32> to vector<8x2x128xf32>
    %277 = vector.extract_strided_slice %271 {offsets = [0, 128], sizes = [16, 128], strides = [1, 1]} : vector<16x256xf32> to vector<16x128xf32>
    %c0_54 = arith.constant 0 : index
    %c0_55 = arith.constant 0 : index
    %278 = vector.load %arg10[%c0_54, %c0_55] : memref<1x128xf32, #tpu.memory_space<vmem>>, vector<1x128xf32>
    %279 = vector.broadcast %278 : vector<1x128xf32> to vector<16x128xf32>
    %280 = arith.addf %277, %279 : vector<16x128xf32>
    %281 = vector.shape_cast %280 : vector<16x128xf32> to vector<8x2x128xf32>
    %282 = vector.extract_strided_slice %276 {offsets = [0, 0, 0], sizes = [1, 2, 128], strides = [1, 1, 1]} : vector<8x2x128xf32> to vector<1x2x128xf32>
    %283 = vector.shape_cast %282 : vector<1x2x128xf32> to vector<2x128xf32>
    %284 = vector.extract_strided_slice %281 {offsets = [7, 0, 0], sizes = [1, 2, 128], strides = [1, 1, 1]} : vector<8x2x128xf32> to vector<1x2x128xf32>
    %285 = vector.shape_cast %284 : vector<1x2x128xf32> to vector<2x128xf32>
    %286 = tpu.concatenate %283, %285 in 0 : vector<2x128xf32>, vector<2x128xf32> -> vector<4x128xf32>
    %287 = vector.extract_strided_slice %276 {offsets = [1, 0, 0], sizes = [1, 2, 128], strides = [1, 1, 1]} : vector<8x2x128xf32> to vector<1x2x128xf32>
    %288 = vector.shape_cast %287 : vector<1x2x128xf32> to vector<2x128xf32>
    %289 = vector.extract_strided_slice %281 {offsets = [6, 0, 0], sizes = [1, 2, 128], strides = [1, 1, 1]} : vector<8x2x128xf32> to vector<1x2x128xf32>
    %290 = vector.shape_cast %289 : vector<1x2x128xf32> to vector<2x128xf32>
    %291 = tpu.concatenate %288, %290 in 0 : vector<2x128xf32>, vector<2x128xf32> -> vector<4x128xf32>
    %292 = vector.extract_strided_slice %276 {offsets = [2, 0, 0], sizes = [1, 2, 128], strides = [1, 1, 1]} : vector<8x2x128xf32> to vector<1x2x128xf32>
    %293 = vector.shape_cast %292 : vector<1x2x128xf32> to vector<2x128xf32>
    %294 = vector.extract_strided_slice %281 {offsets = [5, 0, 0], sizes = [1, 2, 128], strides = [1, 1, 1]} : vector<8x2x128xf32> to vector<1x2x128xf32>
    %295 = vector.shape_cast %294 : vector<1x2x128xf32> to vector<2x128xf32>
    %296 = tpu.concatenate %293, %295 in 0 : vector<2x128xf32>, vector<2x128xf32> -> vector<4x128xf32>
    %297 = vector.extract_strided_slice %276 {offsets = [3, 0, 0], sizes = [1, 2, 128], strides = [1, 1, 1]} : vector<8x2x128xf32> to vector<1x2x128xf32>
    %298 = vector.shape_cast %297 : vector<1x2x128xf32> to vector<2x128xf32>
    %299 = vector.extract_strided_slice %281 {offsets = [4, 0, 0], sizes = [1, 2, 128], strides = [1, 1, 1]} : vector<8x2x128xf32> to vector<1x2x128xf32>
    %300 = vector.shape_cast %299 : vector<1x2x128xf32> to vector<2x128xf32>
    %301 = tpu.concatenate %298, %300 in 0 : vector<2x128xf32>, vector<2x128xf32> -> vector<4x128xf32>
    %302 = vector.extract_strided_slice %276 {offsets = [4, 0, 0], sizes = [1, 2, 128], strides = [1, 1, 1]} : vector<8x2x128xf32> to vector<1x2x128xf32>
    %303 = vector.shape_cast %302 : vector<1x2x128xf32> to vector<2x128xf32>
    %304 = vector.extract_strided_slice %281 {offsets = [3, 0, 0], sizes = [1, 2, 128], strides = [1, 1, 1]} : vector<8x2x128xf32> to vector<1x2x128xf32>
    %305 = vector.shape_cast %304 : vector<1x2x128xf32> to vector<2x128xf32>
    %306 = tpu.concatenate %303, %305 in 0 : vector<2x128xf32>, vector<2x128xf32> -> vector<4x128xf32>
    %307 = vector.extract_strided_slice %276 {offsets = [5, 0, 0], sizes = [1, 2, 128], strides = [1, 1, 1]} : vector<8x2x128xf32> to vector<1x2x128xf32>
    %308 = vector.shape_cast %307 : vector<1x2x128xf32> to vector<2x128xf32>
    %309 = vector.extract_strided_slice %281 {offsets = [2, 0, 0], sizes = [1, 2, 128], strides = [1, 1, 1]} : vector<8x2x128xf32> to vector<1x2x128xf32>
    %310 = vector.shape_cast %309 : vector<1x2x128xf32> to vector<2x128xf32>
    %311 = tpu.concatenate %308, %310 in 0 : vector<2x128xf32>, vector<2x128xf32> -> vector<4x128xf32>
    %312 = vector.extract_strided_slice %276 {offsets = [6, 0, 0], sizes = [1, 2, 128], strides = [1, 1, 1]} : vector<8x2x128xf32> to vector<1x2x128xf32>
    %313 = vector.shape_cast %312 : vector<1x2x128xf32> to vector<2x128xf32>
    %314 = vector.extract_strided_slice %281 {offsets = [1, 0, 0], sizes = [1, 2, 128], strides = [1, 1, 1]} : vector<8x2x128xf32> to vector<1x2x128xf32>
    %315 = vector.shape_cast %314 : vector<1x2x128xf32> to vector<2x128xf32>
    %316 = tpu.concatenate %313, %315 in 0 : vector<2x128xf32>, vector<2x128xf32> -> vector<4x128xf32>
    %317 = vector.extract_strided_slice %276 {offsets = [7, 0, 0], sizes = [1, 2, 128], strides = [1, 1, 1]} : vector<8x2x128xf32> to vector<1x2x128xf32>
    %318 = vector.shape_cast %317 : vector<1x2x128xf32> to vector<2x128xf32>
    %319 = vector.extract_strided_slice %281 {offsets = [0, 0, 0], sizes = [1, 2, 128], strides = [1, 1, 1]} : vector<8x2x128xf32> to vector<1x2x128xf32>
    %320 = vector.shape_cast %319 : vector<1x2x128xf32> to vector<2x128xf32>
    %321 = tpu.concatenate %318, %320 in 0 : vector<2x128xf32>, vector<2x128xf32> -> vector<4x128xf32>
    %c0_56 = arith.constant 0 : index
    %c0_57 = arith.constant 0 : index
    %322 = vector.load %arg8[%c0_56, %c0_57] : memref<32x256xf32, #tpu.memory_space<vmem>>, vector<32x256xf32>
    %cst_58 = arith.constant 0.000000e+00 : f32
    %323 = vector.broadcast %cst_58 : f32 to vector<4x32xf32>
    %cst_59 = arith.constant 0.000000e+00 : f32
    %324 = vector.broadcast %cst_59 : f32 to vector<4x32xf32>
    %cst_60 = arith.constant dense<0.000000e+00> : vector<4x256xf32>
    %325 = tpu.matmul %323, %322, %cst_60 {dimension_numbers = #tpu.dot_dimension_numbers<[1], [0], [0], [1], [0, 0, 1, 1], [], []>} : vector<4x32xf32>, vector<32x256xf32>, vector<4x256xf32> -> vector<4x256xf32>
    %326 = vector.extract_strided_slice %325 {offsets = [0, 0], sizes = [4, 128], strides = [1, 1]} : vector<4x256xf32> to vector<4x128xf32>
    %327 = vector.extract_strided_slice %325 {offsets = [0, 128], sizes = [4, 128], strides = [1, 1]} : vector<4x256xf32> to vector<4x128xf32>
    %328 = arith.select %2, %326, %327 : vector<4x128xi1>, vector<4x128xf32>
    %329 = arith.addf %286, %328 : vector<4x128xf32>
    %cst_61 = arith.constant 5.000000e-01 : f32
    %330 = vector.broadcast %cst_61 : f32 to vector<4x128xf32>
    %331 = arith.mulf %330, %329 : vector<4x128xf32>
    %332 = math.tanh %331 : vector<4x128xf32>
    %cst_62 = arith.constant 5.000000e-01 : f32
    %333 = vector.broadcast %cst_62 : f32 to vector<4x128xf32>
    %334 = arith.mulf %333, %332 : vector<4x128xf32>
    %cst_63 = arith.constant 5.000000e-01 : f32
    %335 = vector.broadcast %cst_63 : f32 to vector<4x128xf32>
    %336 = arith.addf %334, %335 : vector<4x128xf32>
    %337 = math.tanh %329 : vector<4x128xf32>
    %338 = vector.extract_strided_slice %336 {offsets = [0, 32], sizes = [4, 32], strides = [1, 1]} : vector<4x128xf32> to vector<4x32xf32>
    %339 = arith.mulf %338, %324 : vector<4x32xf32>
    %340 = vector.extract_strided_slice %336 {offsets = [0, 0], sizes = [4, 32], strides = [1, 1]} : vector<4x128xf32> to vector<4x32xf32>
    %341 = vector.extract_strided_slice %337 {offsets = [0, 96], sizes = [4, 32], strides = [1, 1]} : vector<4x128xf32> to vector<4x32xf32>
    %342 = arith.mulf %340, %341 : vector<4x32xf32>
    %343 = arith.addf %339, %342 : vector<4x32xf32>
    %344 = vector.extract_strided_slice %336 {offsets = [0, 64], sizes = [4, 32], strides = [1, 1]} : vector<4x128xf32> to vector<4x32xf32>
    %345 = math.tanh %343 : vector<4x32xf32>
    %346 = arith.mulf %344, %345 : vector<4x32xf32>
    %cst_64 = arith.constant dense<0.000000e+00> : vector<4x256xf32>
    %347 = tpu.matmul %346, %322, %cst_64 {dimension_numbers = #tpu.dot_dimension_numbers<[1], [0], [0], [1], [0, 0, 1, 1], [], []>} : vector<4x32xf32>, vector<32x256xf32>, vector<4x256xf32> -> vector<4x256xf32>
    %348 = vector.extract_strided_slice %347 {offsets = [0, 0], sizes = [4, 128], strides = [1, 1]} : vector<4x256xf32> to vector<4x128xf32>
    %349 = vector.extract_strided_slice %347 {offsets = [0, 128], sizes = [4, 128], strides = [1, 1]} : vector<4x256xf32> to vector<4x128xf32>
    %350 = arith.select %2, %348, %349 : vector<4x128xi1>, vector<4x128xf32>
    %351 = arith.addf %291, %350 : vector<4x128xf32>
    %cst_65 = arith.constant 5.000000e-01 : f32
    %352 = vector.broadcast %cst_65 : f32 to vector<4x128xf32>
    %353 = arith.mulf %352, %351 : vector<4x128xf32>
    %354 = math.tanh %353 : vector<4x128xf32>
    %cst_66 = arith.constant 5.000000e-01 : f32
    %355 = vector.broadcast %cst_66 : f32 to vector<4x128xf32>
    %356 = arith.mulf %355, %354 : vector<4x128xf32>
    %cst_67 = arith.constant 5.000000e-01 : f32
    %357 = vector.broadcast %cst_67 : f32 to vector<4x128xf32>
    %358 = arith.addf %356, %357 : vector<4x128xf32>
    %359 = math.tanh %351 : vector<4x128xf32>
    %360 = vector.extract_strided_slice %358 {offsets = [0, 32], sizes = [4, 32], strides = [1, 1]} : vector<4x128xf32> to vector<4x32xf32>
    %361 = arith.mulf %360, %343 : vector<4x32xf32>
    %362 = vector.extract_strided_slice %358 {offsets = [0, 0], sizes = [4, 32], strides = [1, 1]} : vector<4x128xf32> to vector<4x32xf32>
    %363 = vector.extract_strided_slice %359 {offsets = [0, 96], sizes = [4, 32], strides = [1, 1]} : vector<4x128xf32> to vector<4x32xf32>
    %364 = arith.mulf %362, %363 : vector<4x32xf32>
    %365 = arith.addf %361, %364 : vector<4x32xf32>
    %366 = vector.extract_strided_slice %358 {offsets = [0, 64], sizes = [4, 32], strides = [1, 1]} : vector<4x128xf32> to vector<4x32xf32>
    %367 = math.tanh %365 : vector<4x32xf32>
    %368 = arith.mulf %366, %367 : vector<4x32xf32>
    %cst_68 = arith.constant dense<0.000000e+00> : vector<4x256xf32>
    %369 = tpu.matmul %368, %322, %cst_68 {dimension_numbers = #tpu.dot_dimension_numbers<[1], [0], [0], [1], [0, 0, 1, 1], [], []>} : vector<4x32xf32>, vector<32x256xf32>, vector<4x256xf32> -> vector<4x256xf32>
    %370 = vector.extract_strided_slice %369 {offsets = [0, 0], sizes = [4, 128], strides = [1, 1]} : vector<4x256xf32> to vector<4x128xf32>
    %371 = vector.extract_strided_slice %369 {offsets = [0, 128], sizes = [4, 128], strides = [1, 1]} : vector<4x256xf32> to vector<4x128xf32>
    %372 = arith.select %2, %370, %371 : vector<4x128xi1>, vector<4x128xf32>
    %373 = arith.addf %296, %372 : vector<4x128xf32>
    %cst_69 = arith.constant 5.000000e-01 : f32
    %374 = vector.broadcast %cst_69 : f32 to vector<4x128xf32>
    %375 = arith.mulf %374, %373 : vector<4x128xf32>
    %376 = math.tanh %375 : vector<4x128xf32>
    %cst_70 = arith.constant 5.000000e-01 : f32
    %377 = vector.broadcast %cst_70 : f32 to vector<4x128xf32>
    %378 = arith.mulf %377, %376 : vector<4x128xf32>
    %cst_71 = arith.constant 5.000000e-01 : f32
    %379 = vector.broadcast %cst_71 : f32 to vector<4x128xf32>
    %380 = arith.addf %378, %379 : vector<4x128xf32>
    %381 = math.tanh %373 : vector<4x128xf32>
    %382 = vector.extract_strided_slice %380 {offsets = [0, 32], sizes = [4, 32], strides = [1, 1]} : vector<4x128xf32> to vector<4x32xf32>
    %383 = arith.mulf %382, %365 : vector<4x32xf32>
    %384 = vector.extract_strided_slice %380 {offsets = [0, 0], sizes = [4, 32], strides = [1, 1]} : vector<4x128xf32> to vector<4x32xf32>
    %385 = vector.extract_strided_slice %381 {offsets = [0, 96], sizes = [4, 32], strides = [1, 1]} : vector<4x128xf32> to vector<4x32xf32>
    %386 = arith.mulf %384, %385 : vector<4x32xf32>
    %387 = arith.addf %383, %386 : vector<4x32xf32>
    %388 = vector.extract_strided_slice %380 {offsets = [0, 64], sizes = [4, 32], strides = [1, 1]} : vector<4x128xf32> to vector<4x32xf32>
    %389 = math.tanh %387 : vector<4x32xf32>
    %390 = arith.mulf %388, %389 : vector<4x32xf32>
    %cst_72 = arith.constant dense<0.000000e+00> : vector<4x256xf32>
    %391 = tpu.matmul %390, %322, %cst_72 {dimension_numbers = #tpu.dot_dimension_numbers<[1], [0], [0], [1], [0, 0, 1, 1], [], []>} : vector<4x32xf32>, vector<32x256xf32>, vector<4x256xf32> -> vector<4x256xf32>
    %392 = vector.extract_strided_slice %391 {offsets = [0, 0], sizes = [4, 128], strides = [1, 1]} : vector<4x256xf32> to vector<4x128xf32>
    %393 = vector.extract_strided_slice %391 {offsets = [0, 128], sizes = [4, 128], strides = [1, 1]} : vector<4x256xf32> to vector<4x128xf32>
    %394 = arith.select %2, %392, %393 : vector<4x128xi1>, vector<4x128xf32>
    %395 = arith.addf %301, %394 : vector<4x128xf32>
    %cst_73 = arith.constant 5.000000e-01 : f32
    %396 = vector.broadcast %cst_73 : f32 to vector<4x128xf32>
    %397 = arith.mulf %396, %395 : vector<4x128xf32>
    %398 = math.tanh %397 : vector<4x128xf32>
    %cst_74 = arith.constant 5.000000e-01 : f32
    %399 = vector.broadcast %cst_74 : f32 to vector<4x128xf32>
    %400 = arith.mulf %399, %398 : vector<4x128xf32>
    %cst_75 = arith.constant 5.000000e-01 : f32
    %401 = vector.broadcast %cst_75 : f32 to vector<4x128xf32>
    %402 = arith.addf %400, %401 : vector<4x128xf32>
    %403 = math.tanh %395 : vector<4x128xf32>
    %404 = vector.extract_strided_slice %402 {offsets = [0, 32], sizes = [4, 32], strides = [1, 1]} : vector<4x128xf32> to vector<4x32xf32>
    %405 = arith.mulf %404, %387 : vector<4x32xf32>
    %406 = vector.extract_strided_slice %402 {offsets = [0, 0], sizes = [4, 32], strides = [1, 1]} : vector<4x128xf32> to vector<4x32xf32>
    %407 = vector.extract_strided_slice %403 {offsets = [0, 96], sizes = [4, 32], strides = [1, 1]} : vector<4x128xf32> to vector<4x32xf32>
    %408 = arith.mulf %406, %407 : vector<4x32xf32>
    %409 = arith.addf %405, %408 : vector<4x32xf32>
    %410 = vector.extract_strided_slice %402 {offsets = [0, 64], sizes = [4, 32], strides = [1, 1]} : vector<4x128xf32> to vector<4x32xf32>
    %411 = math.tanh %409 : vector<4x32xf32>
    %412 = arith.mulf %410, %411 : vector<4x32xf32>
    %cst_76 = arith.constant dense<0.000000e+00> : vector<4x256xf32>
    %413 = tpu.matmul %412, %322, %cst_76 {dimension_numbers = #tpu.dot_dimension_numbers<[1], [0], [0], [1], [0, 0, 1, 1], [], []>} : vector<4x32xf32>, vector<32x256xf32>, vector<4x256xf32> -> vector<4x256xf32>
    %414 = vector.extract_strided_slice %413 {offsets = [0, 0], sizes = [4, 128], strides = [1, 1]} : vector<4x256xf32> to vector<4x128xf32>
    %415 = vector.extract_strided_slice %413 {offsets = [0, 128], sizes = [4, 128], strides = [1, 1]} : vector<4x256xf32> to vector<4x128xf32>
    %416 = arith.select %2, %414, %415 : vector<4x128xi1>, vector<4x128xf32>
    %417 = arith.addf %306, %416 : vector<4x128xf32>
    %cst_77 = arith.constant 5.000000e-01 : f32
    %418 = vector.broadcast %cst_77 : f32 to vector<4x128xf32>
    %419 = arith.mulf %418, %417 : vector<4x128xf32>
    %420 = math.tanh %419 : vector<4x128xf32>
    %cst_78 = arith.constant 5.000000e-01 : f32
    %421 = vector.broadcast %cst_78 : f32 to vector<4x128xf32>
    %422 = arith.mulf %421, %420 : vector<4x128xf32>
    %cst_79 = arith.constant 5.000000e-01 : f32
    %423 = vector.broadcast %cst_79 : f32 to vector<4x128xf32>
    %424 = arith.addf %422, %423 : vector<4x128xf32>
    %425 = math.tanh %417 : vector<4x128xf32>
    %426 = vector.extract_strided_slice %424 {offsets = [0, 32], sizes = [4, 32], strides = [1, 1]} : vector<4x128xf32> to vector<4x32xf32>
    %427 = arith.mulf %426, %409 : vector<4x32xf32>
    %428 = vector.extract_strided_slice %424 {offsets = [0, 0], sizes = [4, 32], strides = [1, 1]} : vector<4x128xf32> to vector<4x32xf32>
    %429 = vector.extract_strided_slice %425 {offsets = [0, 96], sizes = [4, 32], strides = [1, 1]} : vector<4x128xf32> to vector<4x32xf32>
    %430 = arith.mulf %428, %429 : vector<4x32xf32>
    %431 = arith.addf %427, %430 : vector<4x32xf32>
    %432 = vector.extract_strided_slice %424 {offsets = [0, 64], sizes = [4, 32], strides = [1, 1]} : vector<4x128xf32> to vector<4x32xf32>
    %433 = math.tanh %431 : vector<4x32xf32>
    %434 = arith.mulf %432, %433 : vector<4x32xf32>
    %cst_80 = arith.constant dense<0.000000e+00> : vector<4x256xf32>
    %435 = tpu.matmul %434, %322, %cst_80 {dimension_numbers = #tpu.dot_dimension_numbers<[1], [0], [0], [1], [0, 0, 1, 1], [], []>} : vector<4x32xf32>, vector<32x256xf32>, vector<4x256xf32> -> vector<4x256xf32>
    %436 = vector.extract_strided_slice %435 {offsets = [0, 0], sizes = [4, 128], strides = [1, 1]} : vector<4x256xf32> to vector<4x128xf32>
    %437 = vector.extract_strided_slice %435 {offsets = [0, 128], sizes = [4, 128], strides = [1, 1]} : vector<4x256xf32> to vector<4x128xf32>
    %438 = arith.select %2, %436, %437 : vector<4x128xi1>, vector<4x128xf32>
    %439 = arith.addf %311, %438 : vector<4x128xf32>
    %cst_81 = arith.constant 5.000000e-01 : f32
    %440 = vector.broadcast %cst_81 : f32 to vector<4x128xf32>
    %441 = arith.mulf %440, %439 : vector<4x128xf32>
    %442 = math.tanh %441 : vector<4x128xf32>
    %cst_82 = arith.constant 5.000000e-01 : f32
    %443 = vector.broadcast %cst_82 : f32 to vector<4x128xf32>
    %444 = arith.mulf %443, %442 : vector<4x128xf32>
    %cst_83 = arith.constant 5.000000e-01 : f32
    %445 = vector.broadcast %cst_83 : f32 to vector<4x128xf32>
    %446 = arith.addf %444, %445 : vector<4x128xf32>
    %447 = math.tanh %439 : vector<4x128xf32>
    %448 = vector.extract_strided_slice %446 {offsets = [0, 32], sizes = [4, 32], strides = [1, 1]} : vector<4x128xf32> to vector<4x32xf32>
    %449 = arith.mulf %448, %431 : vector<4x32xf32>
    %450 = vector.extract_strided_slice %446 {offsets = [0, 0], sizes = [4, 32], strides = [1, 1]} : vector<4x128xf32> to vector<4x32xf32>
    %451 = vector.extract_strided_slice %447 {offsets = [0, 96], sizes = [4, 32], strides = [1, 1]} : vector<4x128xf32> to vector<4x32xf32>
    %452 = arith.mulf %450, %451 : vector<4x32xf32>
    %453 = arith.addf %449, %452 : vector<4x32xf32>
    %454 = vector.extract_strided_slice %446 {offsets = [0, 64], sizes = [4, 32], strides = [1, 1]} : vector<4x128xf32> to vector<4x32xf32>
    %455 = math.tanh %453 : vector<4x32xf32>
    %456 = arith.mulf %454, %455 : vector<4x32xf32>
    %cst_84 = arith.constant dense<0.000000e+00> : vector<4x256xf32>
    %457 = tpu.matmul %456, %322, %cst_84 {dimension_numbers = #tpu.dot_dimension_numbers<[1], [0], [0], [1], [0, 0, 1, 1], [], []>} : vector<4x32xf32>, vector<32x256xf32>, vector<4x256xf32> -> vector<4x256xf32>
    %458 = vector.extract_strided_slice %457 {offsets = [0, 0], sizes = [4, 128], strides = [1, 1]} : vector<4x256xf32> to vector<4x128xf32>
    %459 = vector.extract_strided_slice %457 {offsets = [0, 128], sizes = [4, 128], strides = [1, 1]} : vector<4x256xf32> to vector<4x128xf32>
    %460 = arith.select %2, %458, %459 : vector<4x128xi1>, vector<4x128xf32>
    %461 = arith.addf %316, %460 : vector<4x128xf32>
    %cst_85 = arith.constant 5.000000e-01 : f32
    %462 = vector.broadcast %cst_85 : f32 to vector<4x128xf32>
    %463 = arith.mulf %462, %461 : vector<4x128xf32>
    %464 = math.tanh %463 : vector<4x128xf32>
    %cst_86 = arith.constant 5.000000e-01 : f32
    %465 = vector.broadcast %cst_86 : f32 to vector<4x128xf32>
    %466 = arith.mulf %465, %464 : vector<4x128xf32>
    %cst_87 = arith.constant 5.000000e-01 : f32
    %467 = vector.broadcast %cst_87 : f32 to vector<4x128xf32>
    %468 = arith.addf %466, %467 : vector<4x128xf32>
    %469 = math.tanh %461 : vector<4x128xf32>
    %470 = vector.extract_strided_slice %468 {offsets = [0, 32], sizes = [4, 32], strides = [1, 1]} : vector<4x128xf32> to vector<4x32xf32>
    %471 = arith.mulf %470, %453 : vector<4x32xf32>
    %472 = vector.extract_strided_slice %468 {offsets = [0, 0], sizes = [4, 32], strides = [1, 1]} : vector<4x128xf32> to vector<4x32xf32>
    %473 = vector.extract_strided_slice %469 {offsets = [0, 96], sizes = [4, 32], strides = [1, 1]} : vector<4x128xf32> to vector<4x32xf32>
    %474 = arith.mulf %472, %473 : vector<4x32xf32>
    %475 = arith.addf %471, %474 : vector<4x32xf32>
    %476 = vector.extract_strided_slice %468 {offsets = [0, 64], sizes = [4, 32], strides = [1, 1]} : vector<4x128xf32> to vector<4x32xf32>
    %477 = math.tanh %475 : vector<4x32xf32>
    %478 = arith.mulf %476, %477 : vector<4x32xf32>
    %cst_88 = arith.constant dense<0.000000e+00> : vector<4x256xf32>
    %479 = tpu.matmul %478, %322, %cst_88 {dimension_numbers = #tpu.dot_dimension_numbers<[1], [0], [0], [1], [0, 0, 1, 1], [], []>} : vector<4x32xf32>, vector<32x256xf32>, vector<4x256xf32> -> vector<4x256xf32>
    %480 = vector.extract_strided_slice %479 {offsets = [0, 0], sizes = [4, 128], strides = [1, 1]} : vector<4x256xf32> to vector<4x128xf32>
    %481 = vector.extract_strided_slice %479 {offsets = [0, 128], sizes = [4, 128], strides = [1, 1]} : vector<4x256xf32> to vector<4x128xf32>
    %482 = arith.select %2, %480, %481 : vector<4x128xi1>, vector<4x128xf32>
    %483 = arith.addf %321, %482 : vector<4x128xf32>
    %cst_89 = arith.constant 5.000000e-01 : f32
    %484 = vector.broadcast %cst_89 : f32 to vector<4x128xf32>
    %485 = arith.mulf %484, %483 : vector<4x128xf32>
    %486 = math.tanh %485 : vector<4x128xf32>
    %cst_90 = arith.constant 5.000000e-01 : f32
    %487 = vector.broadcast %cst_90 : f32 to vector<4x128xf32>
    %488 = arith.mulf %487, %486 : vector<4x128xf32>
    %cst_91 = arith.constant 5.000000e-01 : f32
    %489 = vector.broadcast %cst_91 : f32 to vector<4x128xf32>
    %490 = arith.addf %488, %489 : vector<4x128xf32>
    %491 = math.tanh %483 : vector<4x128xf32>
    %492 = vector.extract_strided_slice %490 {offsets = [0, 32], sizes = [4, 32], strides = [1, 1]} : vector<4x128xf32> to vector<4x32xf32>
    %493 = arith.mulf %492, %475 : vector<4x32xf32>
    %494 = vector.extract_strided_slice %490 {offsets = [0, 0], sizes = [4, 32], strides = [1, 1]} : vector<4x128xf32> to vector<4x32xf32>
    %495 = vector.extract_strided_slice %491 {offsets = [0, 96], sizes = [4, 32], strides = [1, 1]} : vector<4x128xf32> to vector<4x32xf32>
    %496 = arith.mulf %494, %495 : vector<4x32xf32>
    %497 = arith.addf %493, %496 : vector<4x32xf32>
    %498 = vector.extract_strided_slice %490 {offsets = [0, 64], sizes = [4, 32], strides = [1, 1]} : vector<4x128xf32> to vector<4x32xf32>
    %499 = math.tanh %497 : vector<4x32xf32>
    %500 = arith.mulf %498, %499 : vector<4x32xf32>
    %501 = vector.extract_strided_slice %346 {offsets = [0, 0], sizes = [2, 32], strides = [1, 1]} : vector<4x32xf32> to vector<2x32xf32>
    %502 = vector.extract_strided_slice %500 {offsets = [2, 0], sizes = [2, 32], strides = [1, 1]} : vector<4x32xf32> to vector<2x32xf32>
    %503 = tpu.concatenate %501, %502 in 1 : vector<2x32xf32>, vector<2x32xf32> -> vector<2x64xf32>
    %504 = vector.extract_strided_slice %368 {offsets = [0, 0], sizes = [2, 32], strides = [1, 1]} : vector<4x32xf32> to vector<2x32xf32>
    %505 = vector.extract_strided_slice %478 {offsets = [2, 0], sizes = [2, 32], strides = [1, 1]} : vector<4x32xf32> to vector<2x32xf32>
    %506 = tpu.concatenate %504, %505 in 1 : vector<2x32xf32>, vector<2x32xf32> -> vector<2x64xf32>
    %507 = vector.extract_strided_slice %390 {offsets = [0, 0], sizes = [2, 32], strides = [1, 1]} : vector<4x32xf32> to vector<2x32xf32>
    %508 = vector.extract_strided_slice %456 {offsets = [2, 0], sizes = [2, 32], strides = [1, 1]} : vector<4x32xf32> to vector<2x32xf32>
    %509 = tpu.concatenate %507, %508 in 1 : vector<2x32xf32>, vector<2x32xf32> -> vector<2x64xf32>
    %510 = vector.extract_strided_slice %412 {offsets = [0, 0], sizes = [2, 32], strides = [1, 1]} : vector<4x32xf32> to vector<2x32xf32>
    %511 = vector.extract_strided_slice %434 {offsets = [2, 0], sizes = [2, 32], strides = [1, 1]} : vector<4x32xf32> to vector<2x32xf32>
    %512 = tpu.concatenate %510, %511 in 1 : vector<2x32xf32>, vector<2x32xf32> -> vector<2x64xf32>
    %513 = vector.extract_strided_slice %434 {offsets = [0, 0], sizes = [2, 32], strides = [1, 1]} : vector<4x32xf32> to vector<2x32xf32>
    %514 = vector.extract_strided_slice %412 {offsets = [2, 0], sizes = [2, 32], strides = [1, 1]} : vector<4x32xf32> to vector<2x32xf32>
    %515 = tpu.concatenate %513, %514 in 1 : vector<2x32xf32>, vector<2x32xf32> -> vector<2x64xf32>
    %516 = vector.extract_strided_slice %456 {offsets = [0, 0], sizes = [2, 32], strides = [1, 1]} : vector<4x32xf32> to vector<2x32xf32>
    %517 = vector.extract_strided_slice %390 {offsets = [2, 0], sizes = [2, 32], strides = [1, 1]} : vector<4x32xf32> to vector<2x32xf32>
    %518 = tpu.concatenate %516, %517 in 1 : vector<2x32xf32>, vector<2x32xf32> -> vector<2x64xf32>
    %519 = vector.extract_strided_slice %478 {offsets = [0, 0], sizes = [2, 32], strides = [1, 1]} : vector<4x32xf32> to vector<2x32xf32>
    %520 = vector.extract_strided_slice %368 {offsets = [2, 0], sizes = [2, 32], strides = [1, 1]} : vector<4x32xf32> to vector<2x32xf32>
    %521 = tpu.concatenate %519, %520 in 1 : vector<2x32xf32>, vector<2x32xf32> -> vector<2x64xf32>
    %522 = vector.extract_strided_slice %500 {offsets = [0, 0], sizes = [2, 32], strides = [1, 1]} : vector<4x32xf32> to vector<2x32xf32>
    %523 = vector.extract_strided_slice %346 {offsets = [2, 0], sizes = [2, 32], strides = [1, 1]} : vector<4x32xf32> to vector<2x32xf32>
    %524 = tpu.concatenate %522, %523 in 1 : vector<2x32xf32>, vector<2x32xf32> -> vector<2x64xf32>
    %525 = tpu.concatenate %503, %506, %509, %512, %515, %518, %521, %524 in 0 : vector<2x64xf32>, vector<2x64xf32>, vector<2x64xf32>, vector<2x64xf32>, vector<2x64xf32>, vector<2x64xf32>, vector<2x64xf32>, vector<2x64xf32> -> vector<16x64xf32>
    %526 = arith.truncf %525 : vector<16x64xf32> to vector<16x64xbf16>
    %c0_92 = arith.constant 0 : index
    %c0_93 = arith.constant 0 : index
    %527 = vector.load %arg11[%c0_92, %c0_93] : memref<64x10xbf16, #tpu.memory_space<vmem>>, vector<64x10xbf16>
    %cst_94 = arith.constant dense<0.000000e+00> : vector<16x10xf32>
    %528 = tpu.matmul %526, %527, %cst_94 {dimension_numbers = #tpu.dot_dimension_numbers<[1], [0], [0], [1], [0, 0, 1, 1], [], []>} : vector<16x64xbf16>, vector<64x10xbf16>, vector<16x10xf32> -> vector<16x10xf32>
    %c0_95 = arith.constant 0 : index
    %c0_96 = arith.constant 0 : index
    %529 = vector.load %arg12[%c0_95, %c0_96] : memref<1x10xf32, #tpu.memory_space<vmem>>, vector<1x10xf32>
    %530 = vector.broadcast %529 : vector<1x10xf32> to vector<16x10xf32>
    %531 = arith.addf %528, %530 : vector<16x10xf32>
    %c0_97 = arith.constant 0 : index
    %c0_98 = arith.constant 0 : index
    %532 = vector.load %arg13[%c0_97, %c0_98] : memref<16x10xf32, #tpu.memory_space<vmem>>, vector<16x10xf32>
    tpu.vector_store %arg13[%c0_97, %c0_98], %531 {strides = array<i32>} : memref<16x10xf32, #tpu.memory_space<vmem>>, vector<16x10xf32>,
    return
  }
}

</mosaic_0001>

<bundles_post_ra>
// kernel: rnn_pos_forward.1
= control target key start
LH: loop header
LB: loop body
LE: loop exit
PB: predicated region body
PF: predicated region fallthrough
CT: control target
= control target key end

     0   :  { %18 = vsyncpa [#allocation3], 0  ;;  %s3053_s0 = inlined_call_operand.vmem [shape: f32[16,16], index: 0, kind: input, shape index: {}]   ;;  %s3054_s1 = inlined_call_operand.hbm [shape: bf16[16,32], index: 1, kind: input, shape index: {}]   ;;  %s3055_s2 = inlined_call_operand.hbm [shape: f32[1,32], index: 2, kind: input, shape index: {}]   ;;  %s3056_s3 = inlined_call_operand.vmem [shape: bf16[32,256], index: 3, kind: input, shape index: {}]   ;;  %s3057_s4 = inlined_call_operand.hbm [shape: f32[32,256], index: 4, kind: input, shape index: {}]   ;;  %s3058_s5 = inlined_call_operand.hbm [shape: f32[1,128], index: 5, kind: input, shape index: {}]   ;;  %s3059_s6 = inlined_call_operand.hbm [shape: f32[1,128], index: 6, kind: input, shape index: {}]   ;;  %s3060_s7 = inlined_call_operand.hbm [shape: bf16[64,256], index: 7, kind: input, shape index: {}]   ;;  %s3061_s8 = inlined_call_operand.hbm [shape: f32[32,256], index: 8, kind: input, shape index: {}]   ;;  %s3062_s9 = inlined_call_operand.vmem [shape: f32[1,128], index: 9, kind: input, shape index: {}]   ;;  %s3063_s10 = inlined_call_operand.hbm [shape: f32[1,128], index: 10, kind: input, shape index: {}]   ;;  %s3064_s11 = inlined_call_operand.vmem [shape: bf16[64,10], index: 11, kind: input, shape index: {}]   ;;  %s3065_s12 = inlined_call_operand.hbm [shape: f32[1,10], index: 12, kind: input, shape index: {}]   ;;  %s3066_s13 = inlined_call_operand.hbm [shape: f32[16,10], index: 13, kind: output, shape index: {}]  }
   0x1   :  { %19 = vsyncpa [#allocation6], 0 }
   0x2   :  { %20 = vsyncpa [#allocation9], 0 }
   0x3   :  { %21 = vsyncpa [#allocation12], 0 }
   0x4   :  { %22 = vsyncpa [#allocation15], 0  ;;  %s44_s27 = sshll.u32 %s3055_s2, 4  ;;  %s45_s27 = int_to_ptr.hbm [resolvable:$true] %s44_s27 }
   0x5   :  { %23 = vsyncpa [#allocation4], 0  ;;  %s2378_s28 = smov [#allocation5]   ;;  %s70_s15 = sshll.u32 %s3058_s5, 4  ;;  %s71_s15 = int_to_ptr.hbm [resolvable:$true] %s70_s15 }
   0x6   :  { %s46_s29 = sshll.u32 %s2378_s28, 4  ;;  %s2379_s16 = smov [#allocation8]   ;;  %s47_s29 = int_to_ptr.vmem [resolvable:$true] %s46_s29 }
   0x7   :  { %49 = dma.hbm_to_vmem [thread:$0]  %s45_s27, 16, %s47_s29, [#allocation6]  }
   0x8   :  { %s72_s17 = sshll.u32 %s2379_s16, 4  ;;  %s91_s20 = sshll.u32 %s3060_s7, 4  ;;  %s73_s17 = int_to_ptr.vmem [resolvable:$true] %s72_s17  ;;  %s92_s20 = int_to_ptr.hbm [resolvable:$true] %s91_s20 }
   0x9   :  { %75 = dma.hbm_to_vmem [thread:$0]  %s71_s15, 16, %s73_s17, [#allocation9]  }
   0xa   :  { %s2380_s2 = smov [#allocation11]   ;;  %s120_s24 = sshll.u32 %s3063_s10, 4  ;;  %s121_s24 = int_to_ptr.hbm [resolvable:$true] %s120_s24 }
   0xb   :  { %s93_s21 = sshll.u32 %s2380_s2, 4  ;;  %s2381_s25 = smov 128   ;;  %s94_s21 = int_to_ptr.vmem [resolvable:$true] %s93_s21 }
   0xc   :  { %s2382_s5 = smov 8   ;;  %s2383_s26 = smov [#allocation14]  }
   0xd   :  { %99 = dma.hbm_to_vmem [thread:$0]  %s92_s20, 1024, %s94_s21, [#allocation12], %s2381_s25, %s2381_s25, %s2382_s5  }
   0xe   :  { %s122_s27 = sshll.u32 %s2383_s26, 4  ;;  %s30_s29 = sshll.u32 %s3054_s1, 4  ;;  %s123_s27 = int_to_ptr.vmem [resolvable:$true] %s122_s27  ;;  %s31_s29 = int_to_ptr.hbm [resolvable:$true] %s30_s29 }
   0xf   :  { %125 = dma.hbm_to_vmem [thread:$0]  %s121_s24, 16, %s123_s27, [#allocation15]  }
  0x10   :  { %s2384_s30 = smov [#allocation2]   ;;  %s56_s16 = sshll.u32 %s3057_s4, 4  ;;  %s57_s16 = int_to_ptr.hbm [resolvable:$true] %s56_s16 }
  0x11   :  { %s32_s14 = sshll.u32 %s2384_s30, 4  ;;  %s2385_s17 = smov 64   ;;  %s33_s14 = int_to_ptr.vmem [resolvable:$true] %s32_s14 }
  0x12   :  { %s2386_s18 = smov 4   ;;  %s2387_s19 = smov [#allocation7]  }
  0x13   :  { %38 = dma.hbm_to_vmem [thread:$0]  %s31_s29, 128, %s33_s14, [#allocation3], %s2385_s17, %s2385_s17, %s2386_s18  }
  0x14   :  { %s58_s20 = sshll.u32 %s2387_s19, 4  ;;  %s2388_s1 = smov 256   ;;  %s59_s20 = int_to_ptr.vmem [resolvable:$true] %s58_s20 }
  0x15   :  { %s2389_s2 = smov 16   ;;  %s81_s23 = sshll.u32 %s3059_s6, 4  ;;  %s82_s23 = int_to_ptr.hbm [resolvable:$true] %s81_s23 }
  0x16   :  { %64 = dma.hbm_to_vmem [thread:$0]  %s57_s16, 1024, %s59_s20, [#allocation6], %s2388_s1, %s2388_s1, %s2389_s2  }
  0x17   :  { %s2390_s24 = smov [#allocation10]   ;;  %s104_s7 = sshll.u32 %s3061_s8, 4  ;;  %s105_s7 = int_to_ptr.hbm [resolvable:$true] %s104_s7 }
  0x18   :  { %s83_s26 = sshll.u32 %s2390_s24, 4  ;;  %s2391_s28 = smov [#allocation13]   ;;  %s84_s26 = int_to_ptr.vmem [resolvable:$true] %s83_s26 }
  0x19   :  { %86 = dma.hbm_to_vmem [thread:$0]  %s82_s23, 16, %s84_s26, [#allocation9]  }
  0x1a   :  { %s106_s29 = sshll.u32 %s2391_s28, 4  ;;  %s133_s10 = sshll.u32 %s3065_s12, 4  ;;  %s107_s29 = int_to_ptr.vmem [resolvable:$true] %s106_s29  ;;  %s134_s10 = int_to_ptr.hbm [resolvable:$true] %s133_s10 }
  0x1b   :  { %112 = dma.hbm_to_vmem [thread:$0]  %s105_s7, 1024, %s107_s29, [#allocation12], %s2388_s1, %s2388_s1, %s2389_s2  }
  0x1c   :  { %s2392_s6 = smov [#allocation16]  }
  0x1d   :  { %s135_s15 = sshll.u32 %s2392_s6, 4  ;;  %s136_s15 = int_to_ptr.vmem [resolvable:$true] %s135_s15 }
  0x1e   :  { %138 = dma.hbm_to_vmem [thread:$0]  %s134_s10, 16, %s136_s15, [#allocation15]  }
  0x1f   :  { %2366 = dma.done.wait [#allocation3], 128  }
  0x20   :  { %2367 = vsyncadd [#allocation3], 4294967168 }
  0x21   :  { %2368 = dma.done.wait [#allocation6], 1040  }
  0x22   :  { %2369 = vsyncadd [#allocation6], 4294966256 }
  0x23   :  { %2370 = dma.done.wait [#allocation9], 32  }
  0x24   :  { %2371 = vsyncadd [#allocation9], 4294967264 }
  0x25   :  { %2372 = dma.done.wait [#allocation12], 2048  }
  0x26   :  { %2373 = vsyncadd [#allocation12], 4294965248 }
  0x27   :  { %2374 = dma.done.wait [#allocation15], 32  }
  0x28   :  { %2375 = vsyncadd [#allocation15], 4294967264  ;;  %v1948_v0 = vld [vmem:[#allocation2] sm:$0xff]  ;;  %v179_v1 = vld [vmem:[%s3053_s0] sm:$0xff]  ;;  %vm194_vm0 = vcmask 130048   ;;  %v2393_v22 = vmov 0.0   ;;  %v176_v38 = vlaneseq }
  0x29   :  { %v180_v2 = vld [vmem:[%s3053_s0 + $0x8] sm:$0xff]  ;;  %205 = vmatpush.bf16.msra.mxu1 %v1948_v0  ;;  %v1861_v4 = vld [vmem:[%s3056_s3 + $0x10] sm:$0xf]  ;;  %v1952_v5 = vld [vmem:[%s3056_s3 + $0x14] sm:$0xf0]  ;;  %vm239_vm1 = vcmask 261120  }
  0x2a   :  { %v181_v3 = vpack.c.bf16 %v180_v2, %v179_v1  ;;  %v1951_v6 = vld [vmem:[%s3056_s3 + $0x14] sm:$0xf]  ;;  %v1862_v7 = vor.u32 %v1952_v5, %v1861_v4  ;;  %v1863_v8 = vld [vmem:[%s3056_s3 + $0x18] sm:$0xf0]  ;;  %v1853_v10 = vld [vmem:[%s3056_s3] sm:$0xf] }
  0x2b   :  { %v1866_v9 = vor.u32 %v1951_v6, %v1863_v8  ;;  %v1950_v11 = vld [vmem:[%s3056_s3 + $0x4] sm:$0xf0]  ;;  %v1949_v12 = vld [vmem:[%s3056_s3 + $0x4] sm:$0xf]  ;;  %v1855_v14 = vld [vmem:[%s3056_s3 + $0x8] sm:$0xf0] }
  0x2c   :  { %1850 = vmatmul.msk.bf16.vlgmr.msra.gmra.mxu1 %vm194_vm0, %v181_v3  ;;  %v1854_v13 = vor.u32 %v1950_v11, %v1853_v10  ;;  %v1858_v15 = vor.u32 %v1949_v12, %v1855_v14  ;;  %v2529_v16 = vld [vmem:[#allocation7 + $0x30] sm:$0xff]  ;;  %v2532_v17 = vld [vmem:[#allocation7 + $0x20] sm:$0xff]  ;;  %v2540_v20 = vld [vmem:[#allocation7 + $0x38] sm:$0xff]  ;;  %v2589_v40 = vshrl.u32 %v176_v38, 7  ;;  %vm309_vm3 = vcmask 1041408   ;;  %s2394_s3 = smov 32  }
  0x2d   :  { %249 = vmatpush.bf16.msrb.mxu1 %v1862_v7  ;;  %263 = vmatpush.bf16.msra.mxu2 %v1866_v9  ;;  %v2536_v18 = vld [vmem:[#allocation7 + $0x10] sm:$0xff]  ;;  %v2538_v19 = vld [vmem:[#allocation7] sm:$0xff]  ;;  %v2545_v21 = vld [vmem:[#allocation7 + $0x28] sm:$0xff]  ;;  %s2395_s14 = smov 96   ;;  %vm974_vm4 = vcmask 1043456   ;;  %vm976_vm5 = vcmask 1045504  }
  0x2e   :  { %369 = vmatpush.msra.mxu3 %v2529_v16  ;;  %438 = vmatpush.msra.mxu0 %v2529_v16  ;;  %v2552_v23 = vld [vmem:[#allocation7 + $0x18] sm:$0xff]  ;;  %v2557_v24 = vld [vmem:[#allocation7 + $0x8] sm:$0xff]  ;;  %v2026_v34 = vld [vmem:[#allocation10] ss:$0 sm:$0xff]  ;;  %vm178_vm2 = vcmp.lt.s32.totalorder %v2589_v40, 2  ;;  %vm1030_vm6 = vcmask 523264  }
  0x2f   :  { %v2024_v26 = vld [vmem:[#allocation5] ss:$0 sm:$0xff]  ;;  %v2591_v41 = vld [vmem:[#allocation8] ss:$0 sm:$0xff]  ;;  %vm1820_vm7 = vcmask 80896   ;;  %s1829_s21 = sshll.u32 %s3066_s13, 4  ;;  %s1830_s21 = int_to_ptr.hbm [resolvable:$true] %s1829_s21 }
  0x30   :  { %370 = vmatpush.msra.mxu3 %v2532_v17  ;;  %439 = vmatpush.msra.mxu0 %v2532_v17 }
  0x31   :  { %250 = vmatpush.bf16.msrb.mxu1 %v1854_v13  ;;  %264 = vmatpush.bf16.msra.mxu2 %v1858_v15 }
  0x32   :  { %371 = vmatpush.msra.mxu3 %v2536_v18  ;;  %440 = vmatpush.msra.mxu0 %v2536_v18 }
  0x34   :  { %372 = vmatpush.msra.mxu3 %v2538_v19  ;;  %441 = vmatpush.msra.mxu0 %v2538_v19 }
  0x35   :  { %458 = vmatpush.msrb.mxu2 %v2540_v20  ;;  %596 = vmatpush.msra.mxu1 %v2540_v20 }
  0x36   :  { %373 = vmatmul.f32.vlgmr.msra.gmra.mxu3 %v2393_v22  ;;  %576 = vmatpush.msrb.mxu0 %v2529_v16 }
  0x37   :  { %459 = vmatpush.msrb.mxu2 %v2545_v21  ;;  %389 = vmatpush.msrb.mxu3 %v2540_v20 }
  0x38   :  { %597 = vmatpush.msra.mxu1 %v2545_v21  ;;  %577 = vmatpush.msrb.mxu0 %v2532_v17 }
  0x39   :  { %460 = vmatpush.msrb.mxu2 %v2552_v23  ;;  %390 = vmatpush.msrb.mxu3 %v2545_v21 }
  0x3a   :  { %598 = vmatpush.msra.mxu1 %v2552_v23  ;;  %578 = vmatpush.msrb.mxu0 %v2536_v18 }
  0x3b   :  { %461 = vmatpush.msrb.mxu2 %v2557_v24  ;;  %391 = vmatpush.msrb.mxu3 %v2552_v23 }
  0x3c   :  { %599 = vmatpush.msra.mxu1 %v2557_v24  ;;  %579 = vmatpush.msrb.mxu0 %v2538_v19 }
  0x3d   :  { %392 = vmatpush.msrb.mxu3 %v2557_v24 }
  0x3e   :  { %393 = vmatmul.f32.vlgmr.msrb.gmra.mxu3 %v2393_v22 }
  0x3f   :  { %527 = vmatpush.msra.mxu3 %v2540_v20 }
  0x41   :  { %528 = vmatpush.msra.mxu3 %v2545_v21 }
  0x43   :  { %529 = vmatpush.msra.mxu3 %v2552_v23 }
  0x45   :  { %530 = vmatpush.msra.mxu3 %v2557_v24 }
  0x47   :  { %665 = vmatpush.msrb.mxu3 %v2540_v20 }
  0x49   :  { %666 = vmatpush.msrb.mxu3 %v2545_v21 }
  0x4b   :  { %667 = vmatpush.msrb.mxu3 %v2552_v23 }
  0x4d   :  { %668 = vmatpush.msrb.mxu3 %v2557_v24 }
  0xa9   :  { %v207_v25 = vpop.f32.mrf.mxu1 }
  0xaa   :  { %v208_v27 = vadd.f32 %v2024_v26, %v207_v25 }
  0xac   :  { %v212_v30 = vmax.f32 %v208_v27, 0.0 }
  0xb1   :  { %v209_v28 = vpop.f32.mrf.mxu1 }
  0xb2   :  { %v210_v29 = vadd.f32 %v2024_v26, %v209_v28 }
  0xb4   :  { %v213_v31 = vmax.f32 %v210_v29, 0.0 }
  0xb6   :  { %v214_v32 = vpack.c.bf16 %v213_v31, %v212_v30 }
  0xb8   :  { %1867 = vmatmul.msk.bf16.vlgmr.msrb.gmra.mxu1 %vm239_vm1, %v214_v32  ;;  %1868 = vmatmul.msk.bf16.vlgmr.msra.gmra.mxu2 %vm239_vm1, %v214_v32 }
  0xb9   :  { %507 = vmatpush.msra.mxu2 %v2529_v16  ;;  %734 = vmatpush.msrb.mxu1 %v2540_v20  ;;  %v374_v35 = vpop.f32.mrf.mxu3 }
  0xbb   :  { %508 = vmatpush.msra.mxu2 %v2532_v17  ;;  %735 = vmatpush.msrb.mxu1 %v2545_v21 }
  0xbd   :  { %509 = vmatpush.msra.mxu2 %v2536_v18  ;;  %736 = vmatpush.msrb.mxu1 %v2552_v23 }
  0xbf   :  { %510 = vmatpush.msra.mxu2 %v2538_v19  ;;  %737 = vmatpush.msrb.mxu1 %v2557_v24 }
  0xc1   :  { %v394_v43 = vpop.f32.mrf.mxu3 }
  0xc2   :  { %v397_v48 = vsel %vm178_vm2, %v374_v35, %v394_v43 }
 0x135   :  { %v252_v42 = vpop.f32.mrf.mxu1 }
 0x136   :  { %v2595_v44 = vadd.f32 %v2591_v41, %v252_v42 }
 0x138   :  { %v279_v11 = vrot.slane %v2595_v44, 2  ;;  %v280_v42 = vrot.slane %v2595_v44, 4 }
 0x13b   :  { %v266_v33 = vpop.f32.mrf.mxu2 }
 0x13c   :  { %v295_v54 = vadd.f32 %v2026_v34, %v266_v33 }
 0x13e   :  { %v301_v55 = vrot.slane %v295_v54, 6  ;;  %v300_v57 = vrot.slane %v295_v54, 4  ;;  %v299_v59 = vrot.slane %v295_v54, 2 }
 0x143   :  { %v268_v36 = vpop.f32.mrf.mxu2 }
 0x144   :  { %v296_v37 = vadd.f32 %v2026_v34, %v268_v36 }
 0x146   :  { %v304_v39 = vrot.slane %v296_v37, 6  ;;  %v303_v45 = vrot.slane %v296_v37, 4  ;;  %v302_v50 = vrot.slane %v296_v37, 2 }
 0x148   :  { %306 = vst [vmem:[#allocation1 + $0x1] ss:$4 sm:$0xff] %v304_v39 }
 0x14f   :  { %v307_v46 = vld.sshfl [vmem:[#allocation1] sm:$0xff pattern:$0x73625140] }
 0x150   :  { %312 = vst [vmem:[#allocation1 + $0x1] ss:$4 sm:$0xff] %v303_v45  ;;  %v310_v47 = vsel %vm309_vm3, %v2595_v44, %v307_v46 }
 0x151   :  { %v398_v49 = vadd.f32 %v397_v48, %v310_v47 }
 0x153   :  { %2030 = vtanh.f32 %v398_v49  ;;  %v399_v62 = vmul.f32 0.5, %v398_v49 }
 0x155   :  { %2032 = vtanh.f32 %v399_v62 }
 0x157   :  { %v313_v51 = vld.sshfl [vmem:[#allocation1] sm:$0xff pattern:$0x73625140] }
 0x158   :  { %317 = vst [vmem:[#allocation1 + $0x1] ss:$4 sm:$0xff] %v302_v50  ;;  %v315_v14 = vsel %vm309_vm3, %v279_v11, %v313_v51 }
 0x159   :  { %v2031_v52 = vpop.eup %2030 }
 0x15a   :  { %406 = vrot.lane.b32.xlu0 %v2031_v52, %s2394_s3 }
 0x15b   :  { %v2033_v63 = vpop.eup %2032 }
 0x15c   :  { %v401_v0 = vmul.f32 0.5, %v2033_v63 }
 0x15e   :  { %v402_v1 = vadd.f32 0.5, %v401_v0 }
 0x15f   :  { %v2602_v53 = vld.sshfl [vmem:[#allocation1] sm:$0xff pattern:$0x73625140] }
 0x160   :  { %322 = vst [vmem:[#allocation1 + $0x1] ss:$4 sm:$0xff] %v296_v37  ;;  %v404_v4 = vmul.f32 0.0, %v402_v1  ;;  %v320_v46 = vsel %vm309_vm3, %v280_v42, %v2602_v53 }
 0x167   :  { %v2604_v56 = vld.sshfl [vmem:[#allocation1] sm:$0xff pattern:$0x73625140] }
 0x168   :  { %327 = vst [vmem:[#allocation1 + $0x1] ss:$4 sm:$0xff] %v301_v55 }
 0x16f   :  { %v2606_v58 = vld.sshfl [vmem:[#allocation1] sm:$0xff pattern:$0x73625140] }
 0x170   :  { %332 = vst [vmem:[#allocation1 + $0x1] ss:$4 sm:$0xff] %v300_v57 }
 0x177   :  { %v2608_v60 = vld.sshfl [vmem:[#allocation1] sm:$0xff pattern:$0x73625140] }
 0x178   :  { %337 = vst [vmem:[#allocation1 + $0x1] ss:$4 sm:$0xff] %v299_v59 }
 0x17f   :  { %v2610_v61 = vld.sshfl [vmem:[#allocation1] sm:$0xff pattern:$0x73625140] }
 0x180   :  { %342 = vst [vmem:[#allocation1 + $0x1] ss:$4 sm:$0xff] %v295_v54 }
 0x1cc   :  { %v407_v2 = vpop.permute.xlu0 %406 }
 0x1cd   :  { %v409_v3 = vmul.f32 %v407_v2, %v402_v1 }
 0x1cf   :  { %411 = vrot.lane.b32.xlu0 %v409_v3, %s2394_s3  ;;  %v254_v3 = vpop.f32.mrf.mxu1 }
 0x241   :  { %v412_v5 = vpop.permute.xlu0 %411 }
 0x242   :  { %v414_v6 = vadd.f32 %v412_v5, %v404_v4  ;;  %v281_v4 = vrot.slane %v2595_v44, 6 }
 0x244   :  { %2034 = vtanh.f32 %v414_v6 }
 0x24a   :  { %v2035_v7 = vpop.eup %2034 }
 0x24b   :  { %417 = vrot.lane.b32.xlu1 %v2035_v7, %s2394_s3 }
 0x2bd   :  { %v418_v8 = vpop.permute.xlu1 %417 }
 0x2be   :  { %v2614_v9 = vmul.f32 %v418_v8, %v402_v1 }
 0x2c0   :  { %422 = vrot.lane.b32.xlu1 %v2614_v9, %s2385_s17 }
 0x332   :  { %v2618_v10 = vpop.permute.xlu1 %422 }
 0x333   :  { %1869 = vmatmul.msk.f32.vlgmr.msra.gmra.mxu0 %vm239_vm1, %v2618_v10  ;;  %1870 = vmatmul.msk.f32.vlgmr.msrb.gmra.mxu2 %vm239_vm1, %v2618_v10 }
 0x334   :  { %645 = vmatpush.msrb.mxu2 %v2529_v16  ;;  %714 = vmatpush.msra.mxu0 %v2529_v16 }
 0x336   :  { %646 = vmatpush.msrb.mxu2 %v2532_v17  ;;  %715 = vmatpush.msra.mxu0 %v2532_v17 }
 0x338   :  { %647 = vmatpush.msrb.mxu2 %v2536_v18  ;;  %716 = vmatpush.msra.mxu0 %v2536_v18 }
 0x33a   :  { %648 = vmatpush.msrb.mxu2 %v2538_v19  ;;  %717 = vmatpush.msra.mxu0 %v2538_v19 }
 0x3b0   :  { %v443_v12 = vpop.f32.mrf.mxu0 }
 0x3b6   :  { %v463_v13 = vpop.f32.mrf.mxu2 }
 0x3b7   :  { %v466_v15 = vsel %vm178_vm2, %v443_v12, %v463_v13 }
 0x3b8   :  { %v467_v25 = vadd.f32 %v466_v15, %v315_v14  ;;  %v950_v15 = vrot.slane %v2614_v9, 2 }
 0x3ba   :  { %2036 = vtanh.f32 %v467_v25  ;;  %v468_v27 = vmul.f32 0.5, %v467_v25 }
 0x3bc   :  { %2038 = vtanh.f32 %v468_v27 }
 0x3c0   :  { %v2037_v26 = vpop.eup %2036 }
 0x3c1   :  { %475 = vrot.lane.b32.xlu2 %v2037_v26, %s2394_s3 }
 0x3c2   :  { %v2039_v28 = vpop.eup %2038 }
 0x3c3   :  { %v470_v29 = vmul.f32 0.5, %v2039_v28  ;;  %v2702_v28 = vadd.f32 %v2591_v41, %v254_v3 }
 0x3c5   :  { %v471_v30 = vadd.f32 0.5, %v470_v29  ;;  %v330_v9 = vsel %vm309_vm3, %v2702_v28, %v2606_v58 }
 0x3c7   :  { %v473_v33 = vmul.f32 %v471_v30, %v414_v6 }
 0x41b   :  { %v476_v31 = vpop.permute.xlu2 %475 }
 0x41c   :  { %v478_v32 = vmul.f32 %v476_v31, %v471_v30 }
 0x41e   :  { %480 = vrot.lane.b32.xlu2 %v478_v32, %s2394_s3 }
 0x478   :  { %v481_v34 = vpop.permute.xlu2 %480 }
 0x479   :  { %v483_v35 = vadd.f32 %v481_v34, %v473_v33 }
 0x47b   :  { %2040 = vtanh.f32 %v483_v35 }
 0x481   :  { %v2041_v36 = vpop.eup %2040 }
 0x482   :  { %486 = vrot.lane.b32.xlu0 %v2041_v36, %s2394_s3 }
 0x4f4   :  { %v487_v37 = vpop.permute.xlu0 %486 }
 0x4f5   :  { %v2639_v38 = vmul.f32 %v487_v37, %v471_v30 }
 0x4f7   :  { %491 = vrot.lane.b32.xlu1 %v2639_v38, %s2385_s17 }
 0x569   :  { %v2643_v39 = vpop.permute.xlu1 %491 }
 0x56a   :  { %1871 = vmatmul.msk.f32.vlgmr.msra.gmra.mxu2 %vm239_vm1, %v2643_v39  ;;  %1872 = vmatmul.msk.f32.vlgmr.msra.gmra.mxu3 %vm239_vm1, %v2643_v39 }
 0x56b   :  { %783 = vmatpush.msra.mxu2 %v2529_v16  ;;  %803 = vmatpush.msra.mxu3 %v2540_v20 }
 0x56d   :  { %784 = vmatpush.msra.mxu2 %v2532_v17  ;;  %804 = vmatpush.msra.mxu3 %v2545_v21 }
 0x56f   :  { %785 = vmatpush.msra.mxu2 %v2536_v18  ;;  %805 = vmatpush.msra.mxu3 %v2552_v23 }
 0x571   :  { %786 = vmatpush.msra.mxu2 %v2538_v19  ;;  %806 = vmatpush.msra.mxu3 %v2557_v24 }
 0x5ed   :  { %v512_v43 = vpop.f32.mrf.mxu2  ;;  %v532_v45 = vpop.f32.mrf.mxu3 }
 0x5ee   :  { %v535_v47 = vsel %vm178_vm2, %v512_v43, %v532_v45 }
 0x5ef   :  { %v536_v48 = vadd.f32 %v535_v47, %v320_v46 }
 0x5f1   :  { %2042 = vtanh.f32 %v536_v48  ;;  %v537_v50 = vmul.f32 0.5, %v536_v48 }
 0x5f3   :  { %2044 = vtanh.f32 %v537_v50  ;;  %v282_v50 = vrot.slane %v2702_v28, 2 }
 0x5f7   :  { %v2043_v49 = vpop.eup %2042 }
 0x5f8   :  { %544 = vrot.lane.b32.xlu2 %v2043_v49, %s2394_s3 }
 0x5f9   :  { %v2045_v51 = vpop.eup %2044 }
 0x5fa   :  { %v539_v52 = vmul.f32 0.5, %v2045_v51 }
 0x5fc   :  { %v540_v54 = vadd.f32 0.5, %v539_v52 }
 0x5fe   :  { %v542_v59 = vmul.f32 %v540_v54, %v483_v35 }
 0x652   :  { %v545_v55 = vpop.permute.xlu2 %544 }
 0x653   :  { %v547_v57 = vmul.f32 %v545_v55, %v540_v54 }
 0x655   :  { %549 = vrot.lane.b32.xlu0 %v547_v57, %s2394_s3 }
 0x6c7   :  { %v550_v62 = vpop.permute.xlu0 %549 }
 0x6c8   :  { %v552_v53 = vadd.f32 %v550_v62, %v542_v59 }
 0x6ca   :  { %2046 = vtanh.f32 %v552_v53 }
 0x6d0   :  { %v2047_v63 = vpop.eup %2046 }
 0x6d1   :  { %555 = vrot.lane.b32.xlu1 %v2047_v63, %s2394_s3 }
 0x743   :  { %v556_v0 = vpop.permute.xlu1 %555 }
 0x744   :  { %v2665_v1 = vmul.f32 %v556_v0, %v540_v54  ;;  %v335_v54 = vsel %vm309_vm3, %v282_v50, %v2608_v60 }
 0x746   :  { %560 = vrot.lane.b32.xlu2 %v2665_v1, %s2385_s17 }
 0x7a0   :  { %v2669_v2 = vpop.permute.xlu2 %560 }
 0x7a1   :  { %1873 = vmatmul.msk.f32.vlgmr.msrb.gmra.mxu0 %vm239_vm1, %v2669_v2  ;;  %1874 = vmatmul.msk.f32.vlgmr.msra.gmra.mxu1 %vm239_vm1, %v2669_v2 }
 0x7a2   :  { %852 = vmatpush.msrb.mxu0 %v2529_v16  ;;  %872 = vmatpush.msra.mxu1 %v2540_v20  ;;  %v325_v16 = vsel %vm309_vm3, %v281_v4, %v2604_v56 }
 0x7a4   :  { %853 = vmatpush.msrb.mxu0 %v2532_v17  ;;  %873 = vmatpush.msra.mxu1 %v2545_v21 }
 0x7a6   :  { %854 = vmatpush.msrb.mxu0 %v2536_v18  ;;  %874 = vmatpush.msra.mxu1 %v2552_v23 }
 0x7a8   :  { %855 = vmatpush.msrb.mxu0 %v2538_v19  ;;  %875 = vmatpush.msra.mxu1 %v2557_v24 }
 0x81e   :  { %v581_v5 = vpop.f32.mrf.mxu0  ;;  %v601_v6 = vpop.f32.mrf.mxu1 }
 0x81f   :  { %v604_v17 = vsel %vm178_vm2, %v581_v5, %v601_v6 }
 0x820   :  { %v605_v20 = vadd.f32 %v604_v17, %v325_v16 }
 0x822   :  { %2048 = vtanh.f32 %v605_v20  ;;  %v606_v21 = vmul.f32 0.5, %v605_v20 }
 0x824   :  { %2050 = vtanh.f32 %v606_v21 }
 0x828   :  { %v2049_v18 = vpop.eup %2048 }
 0x829   :  { %613 = vrot.lane.b32.xlu0 %v2049_v18, %s2394_s3  ;;  %v942_v18 = vrot.slane %v2639_v38, 2 }
 0x82a   :  { %v2051_v19 = vpop.eup %2050 }
 0x82b   :  { %v608_v23 = vmul.f32 0.5, %v2051_v19 }
 0x82d   :  { %v609_v24 = vadd.f32 0.5, %v608_v23 }
 0x82f   :  { %v611_v8 = vmul.f32 %v609_v24, %v552_v53 }
 0x89b   :  { %v614_v7 = vpop.permute.xlu0 %613 }
 0x89c   :  { %v616_v44 = vmul.f32 %v614_v7, %v609_v24 }
 0x89e   :  { %618 = vrot.lane.b32.xlu1 %v616_v44, %s2394_s3 }
 0x910   :  { %v619_v11 = vpop.permute.xlu1 %618 }
 0x911   :  { %v621_v56 = vadd.f32 %v619_v11, %v611_v8 }
 0x913   :  { %2052 = vtanh.f32 %v621_v56 }
 0x919   :  { %v2053_v12 = vpop.eup %2052 }
 0x91a   :  { %624 = vrot.lane.b32.xlu2 %v2053_v12, %s2394_s3 }
 0x974   :  { %v625_v13 = vpop.permute.xlu2 %624 }
 0x975   :  { %v627_v14 = vmul.f32 %v625_v13, %v609_v24  ;;  %v283_v24 = vrot.slane %v2702_v28, 4 }
 0x977   :  { %v930_v25 = vrot.slane %v627_v14, 2  ;;  %629 = vrot.lane.b32.xlu0 %v627_v14, %s2385_s17  ;;  %v340_v8 = vsel %vm309_vm3, %v283_v24, %v2610_v61  ;;  %v1903_v24 = vld [vmem:[#allocation11 + $0x28] sm:$0xf0] }
 0x979   :  { %v2693_v26 = vpack.i.bf16 %v950_v15, %v930_v25 }
 0x9e9   :  { %v2695_v27 = vpop.permute.xlu0 %629 }
 0x9ea   :  { %1875 = vmatmul.msk.f32.vlgmr.msrb.gmra.mxu2 %vm239_vm1, %v2695_v27  ;;  %1876 = vmatmul.msk.f32.vlgmr.msrb.gmra.mxu3 %vm239_vm1, %v2695_v27 }
 0xa6d   :  { %v650_v29 = vpop.f32.mrf.mxu2  ;;  %v670_v30 = vpop.f32.mrf.mxu3 }
 0xa6e   :  { %v673_v31 = vsel %vm178_vm2, %v650_v29, %v670_v30 }
 0xa6f   :  { %v674_v32 = vadd.f32 %v673_v31, %v330_v9 }
 0xa71   :  { %2054 = vtanh.f32 %v674_v32  ;;  %v675_v34 = vmul.f32 0.5, %v674_v32 }
 0xa73   :  { %2056 = vtanh.f32 %v675_v34  ;;  %v936_v34 = vrot.slane %v2665_v1, 2 }
 0xa77   :  { %v2055_v33 = vpop.eup %2054 }
 0xa78   :  { %682 = vrot.lane.b32.xlu1 %v2055_v33, %s2394_s3 }
 0xa79   :  { %v2057_v35 = vpop.eup %2056 }
 0xa7a   :  { %v677_v36 = vmul.f32 0.5, %v2057_v35 }
 0xa7c   :  { %v678_v41 = vadd.f32 0.5, %v677_v36 }
 0xa7e   :  { %v680_v43 = vmul.f32 %v678_v41, %v621_v56 }
 0xaea   :  { %v683_v37 = vpop.permute.xlu1 %682 }
 0xaeb   :  { %v685_v42 = vmul.f32 %v683_v37, %v678_v41  ;;  %v343_v37 = vld.sshfl [vmem:[#allocation1] sm:$0xff pattern:$0x73625140] }
 0xaed   :  { %687 = vrot.lane.b32.xlu2 %v685_v42, %s2394_s3  ;;  %v284_v42 = vrot.slane %v2702_v28, 6 }
 0xb47   :  { %v688_v45 = vpop.permute.xlu2 %687 }
 0xb48   :  { %v690_v58 = vadd.f32 %v688_v45, %v680_v43 }
 0xb4a   :  { %2058 = vtanh.f32 %v690_v58 }
 0xb50   :  { %v2059_v46 = vpop.eup %2058 }
 0xb51   :  { %693 = vrot.lane.b32.xlu0 %v2059_v46, %s2394_s3 }
 0xbc3   :  { %v694_v47 = vpop.permute.xlu0 %693 }
 0xbc4   :  { %v2712_v48 = vmul.f32 %v694_v47, %v678_v41 }
 0xbc6   :  { %698 = vrot.lane.b32.xlu1 %v2712_v48, %s2385_s17 }
 0xc38   :  { %v2716_v49 = vpop.permute.xlu1 %698 }
 0xc39   :  { %1877 = vmatmul.msk.f32.vlgmr.msra.gmra.mxu0 %vm239_vm1, %v2716_v49  ;;  %1878 = vmatmul.msk.f32.vlgmr.msrb.gmra.mxu1 %vm239_vm1, %v2716_v49 }
 0xcb6   :  { %v719_v51 = vpop.f32.mrf.mxu0  ;;  %v739_v52 = vpop.f32.mrf.mxu1 }
 0xcb7   :  { %v742_v55 = vsel %vm178_vm2, %v719_v51, %v739_v52 }
 0xcb8   :  { %v743_v57 = vadd.f32 %v742_v55, %v335_v54 }
 0xcba   :  { %2060 = vtanh.f32 %v743_v57  ;;  %v744_v62 = vmul.f32 0.5, %v743_v57 }
 0xcbc   :  { %2062 = vtanh.f32 %v744_v62 }
 0xcc0   :  { %v2061_v59 = vpop.eup %2060 }
 0xcc1   :  { %751 = vrot.lane.b32.xlu2 %v2061_v59, %s2394_s3 }
 0xcc2   :  { %v2063_v53 = vpop.eup %2062 }
 0xcc3   :  { %v746_v63 = vmul.f32 0.5, %v2063_v53 }
 0xcc5   :  { %v747_v0 = vadd.f32 0.5, %v746_v63 }
 0xcc7   :  { %v749_v5 = vmul.f32 %v747_v0, %v690_v58  ;;  %v345_v58 = vsel %vm309_vm3, %v284_v42, %v343_v37 }
 0xd1b   :  { %v752_v3 = vpop.permute.xlu2 %751 }
 0xd1c   :  { %v754_v4 = vmul.f32 %v752_v3, %v747_v0 }
 0xd1e   :  { %756 = vrot.lane.b32.xlu0 %v754_v4, %s2394_s3 }
 0xd90   :  { %v757_v6 = vpop.permute.xlu0 %756 }
 0xd91   :  { %v759_v60 = vadd.f32 %v757_v6, %v749_v5  ;;  %v1909_v5 = vld [vmem:[#allocation11 + $0x30] sm:$0xf]  ;;  %v1960_v6 = vld [vmem:[#allocation11 + $0x34] sm:$0xf0] }
 0xd93   :  { %2064 = vtanh.f32 %v759_v60 }
 0xd99   :  { %v2065_v16 = vpop.eup %2064 }
 0xd9a   :  { %762 = vrot.lane.b32.xlu1 %v2065_v16, %s2394_s3  ;;  %v1910_v16 = vor.u32 %v1960_v6, %v1909_v5 }
 0xd9c   :  { %1038 = vmatpush.bf16.msrb.mxu2 %v1910_v16 }
 0xe0c   :  { %v763_v17 = vpop.permute.xlu1 %762 }
 0xe0d   :  { %v765_v20 = vmul.f32 %v763_v17, %v747_v0  ;;  %v924_v0 = vrot.slane %v2712_v48, 2  ;;  %v1911_v17 = vld [vmem:[#allocation11 + $0x38] sm:$0xf0] }
 0xe0f   :  { %v918_v21 = vrot.slane %v765_v20, 2  ;;  %767 = vrot.lane.b32.xlu2 %v765_v20, %s2385_s17  ;;  %v1901_v20 = vld [vmem:[#allocation11 + $0x20] sm:$0xf] }
 0xe11   :  { %v1989_v19 = vpack.i.bf16 %v942_v18, %v918_v21  ;;  %v1958_v18 = vld [vmem:[#allocation11 + $0x24] sm:$0xf0] }
 0xe69   :  { %v2732_v23 = vpop.permute.xlu2 %767 }
 0xe6a   :  { %1879 = vmatmul.msk.f32.vlgmr.msra.gmra.mxu2 %vm239_vm1, %v2732_v23  ;;  %1880 = vmatmul.msk.f32.vlgmr.msra.gmra.mxu3 %vm239_vm1, %v2732_v23 }
 0xeed   :  { %v788_v7 = vpop.f32.mrf.mxu2  ;;  %v808_v44 = vpop.f32.mrf.mxu3 }
 0xeee   :  { %v811_v38 = vsel %vm178_vm2, %v788_v7, %v808_v44  ;;  %v1902_v7 = vor.u32 %v1958_v18, %v1901_v20  ;;  %v1893_v44 = vld [vmem:[#allocation11 + $0x10] sm:$0xf] }
 0xeef   :  { %v812_v11 = vadd.f32 %v811_v38, %v340_v8  ;;  %v1956_v8 = vld [vmem:[#allocation11 + $0x14] sm:$0xf0]  ;;  %v1955_v38 = vld [vmem:[#allocation11 + $0x14] sm:$0xf] }
 0xef0   :  { %1039 = vmatpush.bf16.msrb.mxu2 %v1902_v7 }
 0xef1   :  { %2066 = vtanh.f32 %v812_v11  ;;  %v813_v12 = vmul.f32 0.5, %v812_v11  ;;  %v1894_v11 = vor.u32 %v1956_v8, %v1893_v44 }
 0xef3   :  { %2068 = vtanh.f32 %v813_v12 }
 0xef4   :  { %1040 = vmatpush.bf16.msrb.mxu2 %v1894_v11 }
 0xef7   :  { %v2067_v56 = vpop.eup %2066 }
 0xef8   :  { %820 = vrot.lane.b32.xlu0 %v2067_v56, %s2394_s3  ;;  %v1895_v56 = vld [vmem:[#allocation11 + $0x18] sm:$0xf0] }
 0xef9   :  { %v2069_v13 = vpop.eup %2068  ;;  %v1898_v12 = vor.u32 %v1955_v38, %v1895_v56 }
 0xefa   :  { %v815_v14 = vmul.f32 0.5, %v2069_v13  ;;  %v1885_v13 = vld [vmem:[#allocation11] sm:$0xf] }
 0xefc   :  { %v816_v15 = vadd.f32 0.5, %v815_v14  ;;  %v1954_v14 = vld [vmem:[#allocation11 + $0x4] sm:$0xf0] }
 0xefe   :  { %v818_v30 = vmul.f32 %v816_v15, %v759_v60  ;;  %v1959_v60 = vld [vmem:[#allocation11 + $0x34] sm:$0xf] }
 0xeff   :  { %v1914_v21 = vor.u32 %v1959_v60, %v1911_v17 }
 0xf01   :  { %1052 = vmatpush.bf16.msrb.mxu3 %v1914_v21 }
 0xf6a   :  { %v821_v25 = vpop.permute.xlu0 %820 }
 0xf6b   :  { %v823_v29 = vmul.f32 %v821_v25, %v816_v15  ;;  %v1886_v25 = vor.u32 %v1954_v14, %v1885_v13 }
 0xf6d   :  { %825 = vrot.lane.b32.xlu1 %v823_v29, %s2394_s3  ;;  %v1887_v29 = vld [vmem:[#allocation11 + $0x8] sm:$0xf0]  ;;  %1041 = vmatpush.bf16.msrb.mxu2 %v1886_v25 }
 0xfdf   :  { %v826_v9 = vpop.permute.xlu1 %825 }
 0xfe0   :  { %v828_v61 = vadd.f32 %v826_v9, %v818_v30  ;;  %v2768_v9 = vld [vmem:[#allocation13 + $0x30] sm:$0xff] }
 0xfe1   :  { %1156 = vmatpush.msra.mxu0 %v2768_v9  ;;  %1363 = vmatpush.msra.mxu2 %v2768_v9 }
 0xfe2   :  { %2070 = vtanh.f32 %v828_v61 }
 0xfe8   :  { %v2071_v31 = vpop.eup %2070 }
 0xfe9   :  { %831 = vrot.lane.b32.xlu2 %v2071_v31, %s2394_s3  ;;  %v2772_v31 = vld [vmem:[#allocation13 + $0x20] sm:$0xff] }
 0xfea   :  { %1157 = vmatpush.msra.mxu0 %v2772_v31  ;;  %1364 = vmatpush.msra.mxu2 %v2772_v31 }
0x1043   :  { %v832_v32 = vpop.permute.xlu2 %831 }
0x1044   :  { %v834_v33 = vmul.f32 %v832_v32, %v816_v15  ;;  %v1953_v15 = vld [vmem:[#allocation11 + $0x4] sm:$0xf]  ;;  %v2776_v32 = vld [vmem:[#allocation13 + $0x28] sm:$0xff] }
0x1045   :  { %v1890_v30 = vor.u32 %v1953_v15, %v1887_v29 }
0x1046   :  { %v912_v35 = vrot.slane %v834_v33, 2  ;;  %836 = vrot.lane.b32.xlu0 %v834_v33, %s2385_s17  ;;  %v2778_v33 = vld [vmem:[#allocation13 + $0x10] sm:$0xff] }
0x1047   :  { %1158 = vmatpush.msra.mxu0 %v2778_v33  ;;  %1365 = vmatpush.msra.mxu2 %v2778_v33 }
0x1048   :  { %v1984_v36 = vpack.i.bf16 %v936_v34, %v912_v35  ;;  %v2780_v34 = vld [vmem:[#allocation13 + $0x18] sm:$0xff]  ;;  %v2786_v35 = vld [vmem:[#allocation13] sm:$0xff] }
0x1049   :  { %1159 = vmatpush.msra.mxu0 %v2786_v35  ;;  %1366 = vmatpush.msra.mxu2 %v2786_v35 }
0x10b8   :  { %v2748_v41 = vpop.permute.xlu0 %836 }
0x10b9   :  { %1881 = vmatmul.msk.f32.vlgmr.msrb.gmra.mxu0 %vm239_vm1, %v2748_v41  ;;  %1882 = vmatmul.msk.f32.vlgmr.msra.gmra.mxu1 %vm239_vm1, %v2748_v41 }
0x10ba   :  { %1225 = vmatpush.msrb.mxu0 %v2768_v9 }
0x10bc   :  { %1226 = vmatpush.msrb.mxu0 %v2772_v31 }
0x10be   :  { %1227 = vmatpush.msrb.mxu0 %v2778_v33 }
0x10c0   :  { %1228 = vmatpush.msrb.mxu0 %v2786_v35 }
0x10c1   :  { %1160 = vmatmul.f32.vlgmr.msra.gmra.mxu0 %v2393_v22 }
0x10c2   :  { %1294 = vmatpush.msra.mxu0 %v2768_v9 }
0x10c4   :  { %1295 = vmatpush.msra.mxu0 %v2772_v31 }
0x10c6   :  { %1296 = vmatpush.msra.mxu0 %v2778_v33 }
0x10c8   :  { %1297 = vmatpush.msra.mxu0 %v2786_v35 }
0x1136   :  { %v857_v43 = vpop.f32.mrf.mxu0  ;;  %v877_v45 = vpop.f32.mrf.mxu1 }
0x1137   :  { %v880_v1 = vsel %vm178_vm2, %v857_v43, %v877_v45 }
0x1138   :  { %v881_v46 = vadd.f32 %v880_v1, %v345_v58 }
0x113a   :  { %2072 = vtanh.f32 %v881_v46  ;;  %v882_v50 = vmul.f32 0.5, %v881_v46 }
0x113c   :  { %2074 = vtanh.f32 %v882_v50 }
0x1140   :  { %v2073_v47 = vpop.eup %2072 }
0x1141   :  { %889 = vrot.lane.b32.xlu1 %v2073_v47, %s2394_s3 }
0x1142   :  { %v2075_v28 = vpop.eup %2074 }
0x1143   :  { %v884_v51 = vmul.f32 0.5, %v2075_v28 }
0x1145   :  { %v885_v52 = vadd.f32 0.5, %v884_v51 }
0x1147   :  { %v887_v57 = vmul.f32 %v885_v52, %v828_v61  ;;  %v2770_v61 = vld [vmem:[#allocation13 + $0x38] sm:$0xff] }
0x1148   :  { %1176 = vmatpush.msrb.mxu1 %v2770_v61 }
0x1149   :  { %1985 = vrot.lane.b32.xlu1 %v1984_v36, %s2395_s14  ;;  %v2788_v36 = vld [vmem:[#allocation13 + $0x8] sm:$0xff] }
0x114a   :  { %1177 = vmatpush.msrb.mxu1 %v2776_v32 }
0x114c   :  { %1178 = vmatpush.msrb.mxu1 %v2780_v34 }
0x114e   :  { %1179 = vmatpush.msrb.mxu1 %v2788_v36 }
0x114f   :  { %1180 = vmatmul.f32.vlgmr.msrb.gmra.mxu1 %v2393_v22 }
0x1150   :  { %1245 = vmatpush.msra.mxu1 %v2770_v61 }
0x1151   :  { %2000 = vrot.lane.b32.xlu1 %v2693_v26, %s2395_s14 }
0x1152   :  { %1246 = vmatpush.msra.mxu1 %v2776_v32 }
0x1154   :  { %1247 = vmatpush.msra.mxu1 %v2780_v34 }
0x1156   :  { %1248 = vmatpush.msra.mxu1 %v2788_v36 }
0x1158   :  { %1314 = vmatpush.msrb.mxu1 %v2770_v61 }
0x115a   :  { %1315 = vmatpush.msrb.mxu1 %v2776_v32 }
0x115c   :  { %1316 = vmatpush.msrb.mxu1 %v2780_v34 }
0x115e   :  { %1317 = vmatpush.msrb.mxu1 %v2788_v36 }
0x11b3   :  { %v890_v54 = vpop.permute.xlu1 %889 }
0x11b4   :  { %v892_v55 = vmul.f32 %v890_v54, %v885_v52 }
0x11b6   :  { %894 = vrot.lane.b32.xlu2 %v892_v55, %s2394_s3 }
0x11bb   :  { %v1986_v37 = vpop.permute.xlu1 %1985 }
0x11bc   :  { %v1988_v45 = vunpack.i.h.bf16 %v1986_v37  ;;  %v1987_v58 = vunpack.i.l.bf16 %v1986_v37 }
0x11be   :  { %1990 = vrot.lane.b32.xlu2 %v1989_v19, %s2395_s14  ;;  %v1957_v19 = vld [vmem:[#allocation11 + $0x24] sm:$0xf]  ;;  %v940_v51 = vsel %vm239_vm1, %v2732_v23, %v1988_v45 }
0x11bf   :  { %v1906_v48 = vor.u32 %v1957_v19, %v1903_v24  ;;  %v965_v23 = vrot.slane %v940_v51, 6  ;;  %v2027_v19 = vld [vmem:[%s3062_s9] ss:$0 sm:$0xff]  ;;  %v1161_v24 = vpop.f32.mrf.mxu0 }
0x11c1   :  { %1053 = vmatpush.bf16.msrb.mxu3 %v1906_v48 }
0x11c3   :  { %v2001_v22 = vpop.permute.xlu1 %2000 }
0x11c4   :  { %v2003_v47 = vunpack.i.h.bf16 %v2001_v22  ;;  %v2002_v50 = vunpack.i.l.bf16 %v2001_v22 }
0x11c5   :  { %1054 = vmatpush.bf16.msrb.mxu3 %v1898_v12 }
0x11c9   :  { %1055 = vmatpush.bf16.msrb.mxu3 %v1890_v30 }
0x11cc   :  { %v1181_v48 = vpop.f32.mrf.mxu1 }
0x11cd   :  { %1383 = vmatpush.msra.mxu3 %v2770_v61  ;;  %v1184_v38 = vsel %vm178_vm2, %v1161_v24, %v1181_v48 }
0x11cf   :  { %1384 = vmatpush.msra.mxu3 %v2776_v32 }
0x11d1   :  { %1385 = vmatpush.msra.mxu3 %v2780_v34 }
0x11d3   :  { %1386 = vmatpush.msra.mxu3 %v2788_v36 }
0x1210   :  { %v895_v59 = vpop.permute.xlu2 %894 }
0x1211   :  { %v897_v62 = vadd.f32 %v895_v59, %v887_v57  ;;  %v934_v59 = vsel %vm239_vm1, %v2716_v49, %v2002_v50 }
0x1213   :  { %2076 = vtanh.f32 %v897_v62 }
0x1218   :  { %v1991_v42 = vpop.permute.xlu2 %1990 }
0x1219   :  { %v2077_v53 = vpop.eup %2076  ;;  %v1993_v43 = vunpack.i.h.bf16 %v1991_v42  ;;  %v1992_v1 = vunpack.i.l.bf16 %v1991_v42 }
0x121a   :  { %900 = vrot.lane.b32.xlu0 %v2077_v53, %s2394_s3 }
0x121b   :  { %v946_v28 = vsel %vm239_vm1, %v2748_v41, %v1993_v43  ;;  %v922_v55 = vsel %vm239_vm1, %v2669_v2, %v1992_v1  ;;  %v978_v2 = vsel %vm309_vm3, %v934_v59, %v965_v23 }
0x121c   :  { %v968_v41 = vrot.slane %v946_v28, 4 }
0x121e   :  { %v979_v5 = vsel %vm974_vm4, %v978_v2, %v968_v41 }
0x128c   :  { %v901_v63 = vpop.permute.xlu0 %900 }
0x128d   :  { %v903_v26 = vmul.f32 %v901_v63, %v885_v52  ;;  %v916_v52 = vsel %vm239_vm1, %v2643_v39, %v1987_v58 }
0x128e   :  { %v956_v63 = vrot.slane %v916_v52, 6 }
0x128f   :  { %v906_v3 = vrot.slane %v903_v26, 2  ;;  %947 = vrot.lane.b32.xlu2 %v903_v26, %s2385_s17  ;;  %v959_v26 = vrot.slane %v922_v55, 4 }
0x1291   :  { %v1994_v4 = vpack.i.bf16 %v924_v0, %v906_v3 }
0x1293   :  { %1995 = vrot.lane.b32.xlu0 %v1994_v4, %s2395_s14 }
0x12e9   :  { %v948_v46 = vpop.permute.xlu2 %947 }
0x12ea   :  { %v954_v54 = vsel %vm239_vm1, %v948_v46, %v2003_v47 }
0x12eb   :  { %v971_v39 = vrot.slane %v954_v54, 2 }
0x12ed   :  { %v980_v60 = vsel %vm976_vm5, %v979_v5, %v971_v39 }
0x1305   :  { %v1996_v57 = vpop.permute.xlu0 %1995 }
0x1306   :  { %v1998_v62 = vunpack.i.h.bf16 %v1996_v57  ;;  %v1997_v53 = vunpack.i.l.bf16 %v1996_v57 }
0x1308   :  { %v928_v0 = vsel %vm239_vm1, %v2695_v27, %v1998_v62  ;;  %v910_v3 = vsel %vm239_vm1, %v2618_v10, %v1997_v53  ;;  %v2028_v27 = vld [vmem:[#allocation14] ss:$0 sm:$0xff] }
0x1309   :  { %v962_v4 = vrot.slane %v928_v0, 2  ;;  %v973_v49 = vsel %vm309_vm3, %v910_v3, %v956_v63 }
0x130a   :  { %v975_v6 = vsel %vm974_vm4, %v973_v49, %v959_v26 }
0x130b   :  { %v977_v16 = vsel %vm976_vm5, %v975_v6, %v962_v4 }
0x130c   :  { %v981_v17 = vpack.c.bf16 %v980_v60, %v977_v16 }
0x130e   :  { %1915 = vmatmul.msk.bf16.vlgmr.msrb.gmra.mxu2 %vm1030_vm6, %v981_v17  ;;  %1916 = vmatmul.msk.bf16.vlgmr.msrb.gmra.mxu3 %vm1030_vm6, %v981_v17 }
0x130f   :  { %1501 = vmatpush.msrb.mxu2 %v2768_v9  ;;  %1521 = vmatpush.msrb.mxu3 %v2770_v61 }
0x1311   :  { %1502 = vmatpush.msrb.mxu2 %v2772_v31  ;;  %1522 = vmatpush.msrb.mxu3 %v2776_v32 }
0x1313   :  { %1503 = vmatpush.msrb.mxu2 %v2778_v33  ;;  %1523 = vmatpush.msrb.mxu3 %v2780_v34 }
0x1315   :  { %1504 = vmatpush.msrb.mxu2 %v2786_v35  ;;  %1524 = vmatpush.msrb.mxu3 %v2788_v36 }
0x1391   :  { %v1057_v10 = vpop.f32.mrf.mxu3  ;;  %v1043_v7 = vpop.f32.mrf.mxu2 }
0x1392   :  { %v1066_v44 = vadd.f32 %v2027_v19, %v1043_v7  ;;  %v1086_v22 = vadd.f32 %v2028_v27, %v1057_v10 }
0x1394   :  { %v1070_v14 = vrot.slane %v1066_v44, 2  ;;  %v1071_v30 = vrot.slane %v1066_v44, 4  ;;  %v1092_v43 = vrot.slane %v1086_v22, 6  ;;  %v1072_v45 = vrot.slane %v1066_v44, 6 }
0x1395   :  { %v1091_v47 = vrot.slane %v1086_v22, 4  ;;  %v1090_v52 = vrot.slane %v1086_v22, 2 }
0x1399   :  { %v1059_v20 = vpop.f32.mrf.mxu3  ;;  %v1045_v46 = vpop.f32.mrf.mxu2 }
0x139a   :  { %v1087_v18 = vadd.f32 %v2028_v27, %v1059_v20  ;;  %v2863_v50 = vadd.f32 %v2027_v19, %v1045_v46 }
0x139c   :  { %v1095_v21 = vrot.slane %v1087_v18, 6  ;;  %v1094_v8 = vrot.slane %v1087_v18, 4  ;;  %v1093_v13 = vrot.slane %v1087_v18, 2  ;;  %v1073_v54 = vrot.slane %v2863_v50, 2 }
0x139d   :  { %v1074_v59 = vrot.slane %v2863_v50, 4 }
0x139e   :  { %1097 = vst [vmem:[#allocation1 + $0x1] ss:$4 sm:$0xff] %v1095_v21 }
0x13a5   :  { %v1098_v11 = vld.sshfl [vmem:[#allocation1] sm:$0xff pattern:$0x73625140] }
0x13a6   :  { %v1100_v56 = vsel %vm309_vm3, %v1066_v44, %v1098_v11  ;;  %1102 = vst [vmem:[#allocation1 + $0x1] ss:$4 sm:$0xff] %v1094_v8 }
0x13a7   :  { %v1185_v12 = vadd.f32 %v1184_v38, %v1100_v56 }
0x13a9   :  { %2078 = vtanh.f32 %v1185_v12  ;;  %v1186_v53 = vmul.f32 0.5, %v1185_v12 }
0x13ab   :  { %2080 = vtanh.f32 %v1186_v53 }
0x13ad   :  { %v1103_v15 = vld.sshfl [vmem:[#allocation1] sm:$0xff pattern:$0x73625140] }
0x13ae   :  { %v1105_v25 = vsel %vm309_vm3, %v1070_v14, %v1103_v15  ;;  %1107 = vst [vmem:[#allocation1 + $0x1] ss:$4 sm:$0xff] %v1093_v13 }
0x13af   :  { %v2079_v29 = vpop.eup %2078 }
0x13b0   :  { %1193 = vrot.lane.b32.xlu0 %v2079_v29, %s2394_s3 }
0x13b1   :  { %v2081_v23 = vpop.eup %2080 }
0x13b2   :  { %v1188_v63 = vmul.f32 0.5, %v2081_v23 }
0x13b4   :  { %v1189_v39 = vadd.f32 0.5, %v1188_v63 }
0x13b5   :  { %v1108_v37 = vld.sshfl [vmem:[#allocation1] sm:$0xff pattern:$0x73625140] }
0x13b6   :  { %v2858_v42 = vsel %vm309_vm3, %v1071_v30, %v1108_v37  ;;  %1112 = vst [vmem:[#allocation1 + $0x1] ss:$4 sm:$0xff] %v1087_v18  ;;  %v1191_v3 = vmul.f32 0.0, %v1189_v39 }
0x13bd   :  { %v1113_v58 = vld.sshfl [vmem:[#allocation1] sm:$0xff pattern:$0x73625140] }
0x13be   :  { %v2861_v1 = vsel %vm309_vm3, %v1072_v45, %v1113_v58  ;;  %1117 = vst [vmem:[#allocation1 + $0x1] ss:$4 sm:$0xff] %v1092_v43 }
0x13c5   :  { %v1118_v28 = vld.sshfl [vmem:[#allocation1] sm:$0xff pattern:$0x73625140] }
0x13c6   :  { %v2867_v51 = vsel %vm309_vm3, %v2863_v50, %v1118_v28  ;;  %1122 = vst [vmem:[#allocation1 + $0x1] ss:$4 sm:$0xff] %v1091_v47 }
0x13cd   :  { %v1123_v55 = vld.sshfl [vmem:[#allocation1] sm:$0xff pattern:$0x73625140] }
0x13ce   :  { %v2871_v57 = vsel %vm309_vm3, %v1073_v54, %v1123_v55  ;;  %1127 = vst [vmem:[#allocation1 + $0x1] ss:$4 sm:$0xff] %v1090_v52 }
0x13d5   :  { %v1128_v41 = vld.sshfl [vmem:[#allocation1] sm:$0xff pattern:$0x73625140] }
0x13d6   :  { %v2875_v62 = vsel %vm309_vm3, %v1074_v59, %v1128_v41  ;;  %1132 = vst [vmem:[#allocation1 + $0x1] ss:$4 sm:$0xff] %v1086_v22 }
0x1422   :  { %v1194_v26 = vpop.permute.xlu0 %1193 }
0x1423   :  { %v1196_v0 = vmul.f32 %v1194_v26, %v1189_v39 }
0x1425   :  { %1198 = vrot.lane.b32.xlu1 %v1196_v0, %s2394_s3 }
0x1497   :  { %v1199_v2 = vpop.permute.xlu1 %1198 }
0x1498   :  { %v1201_v4 = vadd.f32 %v1199_v2, %v1191_v3 }
0x149a   :  { %2082 = vtanh.f32 %v1201_v4 }
0x14a0   :  { %v2083_v49 = vpop.eup %2082 }
0x14a1   :  { %1204 = vrot.lane.b32.xlu2 %v2083_v49, %s2394_s3 }
0x14fb   :  { %v1205_v5 = vpop.permute.xlu2 %1204 }
0x14fc   :  { %v2879_v6 = vmul.f32 %v1205_v5, %v1189_v39 }
0x14fe   :  { %1209 = vrot.lane.b32.xlu0 %v2879_v6, %s2385_s17  ;;  %v1737_v2 = vrot.slane %v2879_v6, 2 }
0x1570   :  { %v2883_v60 = vpop.permute.xlu0 %1209 }
0x1571   :  { %1917 = vmatmul.msk.f32.vlgmr.msrb.gmra.mxu0 %vm239_vm1, %v2883_v60  ;;  %1918 = vmatmul.msk.f32.vlgmr.msra.gmra.mxu1 %vm239_vm1, %v2883_v60 }
0x1572   :  { %1432 = vmatpush.msrb.mxu0 %v2768_v9  ;;  %1452 = vmatpush.msra.mxu1 %v2770_v61 }
0x1574   :  { %1433 = vmatpush.msrb.mxu0 %v2772_v31  ;;  %1453 = vmatpush.msra.mxu1 %v2776_v32 }
0x1576   :  { %1434 = vmatpush.msrb.mxu0 %v2778_v33  ;;  %1454 = vmatpush.msra.mxu1 %v2780_v34 }
0x1578   :  { %1435 = vmatpush.msrb.mxu0 %v2786_v35  ;;  %1455 = vmatpush.msra.mxu1 %v2788_v36 }
0x15ee   :  { %v1230_v16 = vpop.f32.mrf.mxu0  ;;  %v1250_v17 = vpop.f32.mrf.mxu1 }
0x15ef   :  { %v1253_v10 = vsel %vm178_vm2, %v1230_v16, %v1250_v17 }
0x15f0   :  { %v1254_v27 = vadd.f32 %v1253_v10, %v1105_v25 }
0x15f2   :  { %2084 = vtanh.f32 %v1254_v27  ;;  %v1255_v18 = vmul.f32 0.5, %v1254_v27 }
0x15f4   :  { %2086 = vtanh.f32 %v1255_v18 }
0x15f8   :  { %v2085_v20 = vpop.eup %2084 }
0x15f9   :  { %1262 = vrot.lane.b32.xlu1 %v2085_v20, %s2394_s3 }
0x15fa   :  { %v2087_v21 = vpop.eup %2086 }
0x15fb   :  { %v1257_v19 = vmul.f32 0.5, %v2087_v21 }
0x15fd   :  { %v1258_v24 = vadd.f32 0.5, %v1257_v19 }
0x15ff   :  { %v1260_v44 = vmul.f32 %v1258_v24, %v1201_v4 }
0x166b   :  { %v1263_v7 = vpop.permute.xlu1 %1262 }
0x166c   :  { %v1265_v48 = vmul.f32 %v1263_v7, %v1258_v24 }
0x166e   :  { %1267 = vrot.lane.b32.xlu2 %v1265_v48, %s2394_s3 }
0x16c8   :  { %v1268_v8 = vpop.permute.xlu2 %1267 }
0x16c9   :  { %v1270_v38 = vadd.f32 %v1268_v8, %v1260_v44 }
0x16cb   :  { %2088 = vtanh.f32 %v1270_v38 }
0x16d1   :  { %v2089_v11 = vpop.eup %2088 }
0x16d2   :  { %1273 = vrot.lane.b32.xlu0 %v2089_v11, %s2394_s3 }
0x1744   :  { %v1274_v56 = vpop.permute.xlu0 %1273 }
0x1745   :  { %v2902_v12 = vmul.f32 %v1274_v56, %v1258_v24 }
0x1747   :  { %1278 = vrot.lane.b32.xlu1 %v2902_v12, %s2385_s17 }
0x17b9   :  { %v2906_v13 = vpop.permute.xlu1 %1278 }
0x17ba   :  { %1919 = vmatmul.msk.f32.vlgmr.msra.gmra.mxu0 %vm239_vm1, %v2906_v13  ;;  %1920 = vmatmul.msk.f32.vlgmr.msrb.gmra.mxu1 %vm239_vm1, %v2906_v13 }
0x17bb   :  { %1570 = vmatpush.msra.mxu0 %v2768_v9  ;;  %1590 = vmatpush.msrb.mxu1 %v2770_v61 }
0x17bd   :  { %1571 = vmatpush.msra.mxu0 %v2772_v31  ;;  %1591 = vmatpush.msrb.mxu1 %v2776_v32 }
0x17bf   :  { %1572 = vmatpush.msra.mxu0 %v2778_v33  ;;  %1592 = vmatpush.msrb.mxu1 %v2780_v34 }
0x17c1   :  { %1573 = vmatpush.msra.mxu0 %v2786_v35  ;;  %1593 = vmatpush.msrb.mxu1 %v2788_v36 }
0x1837   :  { %v1299_v14 = vpop.f32.mrf.mxu0  ;;  %v1319_v15 = vpop.f32.mrf.mxu1 }
0x1838   :  { %v1322_v25 = vsel %vm178_vm2, %v1299_v14, %v1319_v15 }
0x1839   :  { %v1323_v29 = vadd.f32 %v1322_v25, %v2858_v42 }
0x183b   :  { %2090 = vtanh.f32 %v1323_v29  ;;  %v1324_v37 = vmul.f32 0.5, %v1323_v29 }
0x183d   :  { %2092 = vtanh.f32 %v1324_v37 }
0x1841   :  { %v2091_v30 = vpop.eup %2090 }
0x1842   :  { %1331 = vrot.lane.b32.xlu2 %v2091_v30, %s2394_s3 }
0x1843   :  { %v2093_v22 = vpop.eup %2092 }
0x1844   :  { %v1326_v43 = vmul.f32 0.5, %v2093_v22 }
0x1846   :  { %v1327_v45 = vadd.f32 0.5, %v1326_v43 }
0x1848   :  { %v1329_v47 = vmul.f32 %v1327_v45, %v1270_v38 }
0x189c   :  { %v1332_v58 = vpop.permute.xlu2 %1331 }
0x189d   :  { %v1334_v46 = vmul.f32 %v1332_v58, %v1327_v45 }
0x189f   :  { %1336 = vrot.lane.b32.xlu0 %v1334_v46, %s2394_s3 }
0x1911   :  { %v1337_v28 = vpop.permute.xlu0 %1336 }
0x1912   :  { %v1339_v52 = vadd.f32 %v1337_v28, %v1329_v47 }
0x1914   :  { %2094 = vtanh.f32 %v1339_v52 }
0x191a   :  { %v2095_v54 = vpop.eup %2094 }
0x191b   :  { %1342 = vrot.lane.b32.xlu1 %v2095_v54, %s2394_s3 }
0x198d   :  { %v1343_v42 = vpop.permute.xlu1 %1342 }
0x198e   :  { %v2926_v55 = vmul.f32 %v1343_v42, %v1327_v45 }
0x1990   :  { %1347 = vrot.lane.b32.xlu2 %v2926_v55, %s2385_s17 }
0x19ea   :  { %v2930_v59 = vpop.permute.xlu2 %1347 }
0x19eb   :  { %1921 = vmatmul.msk.f32.vlgmr.msra.gmra.mxu2 %vm239_vm1, %v2930_v59  ;;  %1922 = vmatmul.msk.f32.vlgmr.msra.gmra.mxu3 %vm239_vm1, %v2930_v59 }
0x19ec   :  { %1639 = vmatpush.msra.mxu2 %v2768_v9  ;;  %1659 = vmatpush.msra.mxu3 %v2770_v61 }
0x19ee   :  { %1640 = vmatpush.msra.mxu2 %v2772_v31  ;;  %1660 = vmatpush.msra.mxu3 %v2776_v32 }
0x19f0   :  { %1641 = vmatpush.msra.mxu2 %v2778_v33  ;;  %1661 = vmatpush.msra.mxu3 %v2780_v34 }
0x19f2   :  { %1642 = vmatpush.msra.mxu2 %v2786_v35  ;;  %1662 = vmatpush.msra.mxu3 %v2788_v36 }
0x1a6e   :  { %v1368_v41 = vpop.f32.mrf.mxu2  ;;  %v1388_v53 = vpop.f32.mrf.mxu3 }
0x1a6f   :  { %v1391_v23 = vsel %vm178_vm2, %v1368_v41, %v1388_v53  ;;  %v1729_v41 = vrot.slane %v2902_v12, 2 }
0x1a70   :  { %v1392_v9 = vadd.f32 %v1391_v23, %v2861_v1 }
0x1a72   :  { %2096 = vtanh.f32 %v1392_v9  ;;  %v1393_v31 = vmul.f32 0.5, %v1392_v9 }
0x1a74   :  { %2098 = vtanh.f32 %v1393_v31 }
0x1a78   :  { %v2097_v61 = vpop.eup %2096 }
0x1a79   :  { %1400 = vrot.lane.b32.xlu0 %v2097_v61, %s2394_s3 }
0x1a7a   :  { %v2099_v32 = vpop.eup %2098 }
0x1a7b   :  { %v1395_v33 = vmul.f32 0.5, %v2099_v32 }
0x1a7d   :  { %v1396_v34 = vadd.f32 0.5, %v1395_v33 }
0x1a7f   :  { %v1398_v36 = vmul.f32 %v1396_v34, %v1339_v52 }
0x1aeb   :  { %v1401_v63 = vpop.permute.xlu0 %1400 }
0x1aec   :  { %v1403_v35 = vmul.f32 %v1401_v63, %v1396_v34 }
0x1aee   :  { %1405 = vrot.lane.b32.xlu1 %v1403_v35, %s2394_s3 }
0x1b60   :  { %v1406_v39 = vpop.permute.xlu1 %1405 }
0x1b61   :  { %v1408_v26 = vadd.f32 %v1406_v39, %v1398_v36 }
0x1b63   :  { %2100 = vtanh.f32 %v1408_v26 }
0x1b69   :  { %v2101_v0 = vpop.eup %2100 }
0x1b6a   :  { %1411 = vrot.lane.b32.xlu2 %v2101_v0, %s2394_s3 }
0x1bc4   :  { %v1412_v1 = vpop.permute.xlu2 %1411 }
0x1bc5   :  { %v1414_v3 = vmul.f32 %v1412_v1, %v1396_v34 }
0x1bc7   :  { %v1717_v4 = vrot.slane %v1414_v3, 2  ;;  %1416 = vrot.lane.b32.xlu0 %v1414_v3, %s2385_s17 }
0x1bc9   :  { %v2952_v49 = vpack.i.bf16 %v1737_v2, %v1717_v4 }
0x1c39   :  { %v2954_v5 = vpop.permute.xlu0 %1416 }
0x1c3a   :  { %1923 = vmatmul.msk.f32.vlgmr.msrb.gmra.mxu0 %vm239_vm1, %v2954_v5  ;;  %1924 = vmatmul.msk.f32.vlgmr.msra.gmra.mxu1 %vm239_vm1, %v2954_v5 }
0x1cb7   :  { %v1437_v16 = vpop.f32.mrf.mxu0  ;;  %v1457_v17 = vpop.f32.mrf.mxu1 }
0x1cb8   :  { %v1460_v10 = vsel %vm178_vm2, %v1437_v16, %v1457_v17  ;;  %v1723_v16 = vrot.slane %v2926_v55, 2 }
0x1cb9   :  { %v1461_v6 = vadd.f32 %v1460_v10, %v2867_v51 }
0x1cbb   :  { %2102 = vtanh.f32 %v1461_v6  ;;  %v1462_v20 = vmul.f32 0.5, %v1461_v6 }
0x1cbd   :  { %2104 = vtanh.f32 %v1462_v20  ;;  %v1075_v20 = vrot.slane %v2863_v50, 6 }
0x1cc1   :  { %v2103_v27 = vpop.eup %2102 }
0x1cc2   :  { %1469 = vrot.lane.b32.xlu1 %v2103_v27, %s2394_s3  ;;  %v1133_v27 = vld.sshfl [vmem:[#allocation1] sm:$0xff pattern:$0x73625140] }
0x1cc3   :  { %v2105_v18 = vpop.eup %2104 }
0x1cc4   :  { %v1464_v21 = vmul.f32 0.5, %v2105_v18 }
0x1cc6   :  { %v1465_v19 = vadd.f32 0.5, %v1464_v21 }
0x1cc8   :  { %v1467_v48 = vmul.f32 %v1465_v19, %v1408_v26 }
0x1d34   :  { %v1470_v24 = vpop.permute.xlu1 %1469 }
0x1d35   :  { %v1472_v7 = vmul.f32 %v1470_v24, %v1465_v19 }
0x1d37   :  { %1474 = vrot.lane.b32.xlu2 %v1472_v7, %s2394_s3 }
0x1d91   :  { %v1475_v44 = vpop.permute.xlu2 %1474 }
0x1d92   :  { %v1477_v8 = vadd.f32 %v1475_v44, %v1467_v48 }
0x1d94   :  { %2106 = vtanh.f32 %v1477_v8 }
0x1d9a   :  { %v2107_v38 = vpop.eup %2106 }
0x1d9b   :  { %1480 = vrot.lane.b32.xlu0 %v2107_v38, %s2394_s3 }
0x1e0d   :  { %v1481_v51 = vpop.permute.xlu0 %1480 }
0x1e0e   :  { %v2966_v11 = vmul.f32 %v1481_v51, %v1465_v19  ;;  %v1135_v19 = vsel %vm309_vm3, %v1075_v20, %v1133_v27 }
0x1e10   :  { %1485 = vrot.lane.b32.xlu1 %v2966_v11, %s2385_s17 }
0x1e82   :  { %v2970_v56 = vpop.permute.xlu1 %1485 }
0x1e83   :  { %1925 = vmatmul.msk.f32.vlgmr.msrb.gmra.mxu2 %vm239_vm1, %v2970_v56  ;;  %1926 = vmatmul.msk.f32.vlgmr.msrb.gmra.mxu3 %vm239_vm1, %v2970_v56 }
0x1f06   :  { %v1506_v14 = vpop.f32.mrf.mxu2  ;;  %v1526_v15 = vpop.f32.mrf.mxu3 }
0x1f07   :  { %v1529_v25 = vsel %vm178_vm2, %v1506_v14, %v1526_v15 }
0x1f08   :  { %v1530_v29 = vadd.f32 %v1529_v25, %v2871_v57 }
0x1f0a   :  { %2108 = vtanh.f32 %v1530_v29  ;;  %v1531_v37 = vmul.f32 0.5, %v1530_v29 }
0x1f0c   :  { %2110 = vtanh.f32 %v1531_v37 }
0x1f10   :  { %v2109_v30 = vpop.eup %2108 }
0x1f11   :  { %1538 = vrot.lane.b32.xlu2 %v2109_v30, %s2394_s3  ;;  %v1711_v30 = vrot.slane %v2966_v11, 2  ;;  %v1962_v11 = vld [vmem:[%s3064_s11 + $0x8] sm:$0xff] }
0x1f12   :  { %v2111_v22 = vpop.eup %2110 }
0x1f13   :  { %v1533_v43 = vmul.f32 0.5, %v2111_v22 }
0x1f15   :  { %v1534_v45 = vadd.f32 0.5, %v1533_v43  ;;  %v1964_v43 = vld [vmem:[%s3064_s11 + $0x18] sm:$0xff] }
0x1f16   :  { %1810 = vmatpush.bf16.msrb.mxu0 %v1964_v43 }
0x1f17   :  { %v1536_v47 = vmul.f32 %v1534_v45, %v1477_v8 }
0x1f6b   :  { %v1539_v58 = vpop.permute.xlu2 %1538 }
0x1f6c   :  { %v1541_v46 = vmul.f32 %v1539_v58, %v1534_v45  ;;  %v1961_v58 = vld [vmem:[%s3064_s11] sm:$0xff] }
0x1f6e   :  { %1543 = vrot.lane.b32.xlu0 %v1541_v46, %s2394_s3 }
0x1fe0   :  { %v1544_v28 = vpop.permute.xlu0 %1543 }
0x1fe1   :  { %v1546_v52 = vadd.f32 %v1544_v28, %v1536_v47 }
0x1fe3   :  { %2112 = vtanh.f32 %v1546_v52 }
0x1fe9   :  { %v2113_v54 = vpop.eup %2112 }
0x1fea   :  { %1549 = vrot.lane.b32.xlu1 %v2113_v54, %s2394_s3 }
0x205c   :  { %v1550_v57 = vpop.permute.xlu1 %1549 }
0x205d   :  { %v1552_v42 = vmul.f32 %v1550_v57, %v1534_v45  ;;  %v1963_v45 = vld [vmem:[%s3064_s11 + $0x10] sm:$0xff]  ;;  %s2396_s11 = smov [#allocation17]  }
0x205e   :  { %1811 = vmatpush.bf16.msrb.mxu0 %v1963_v45  ;;  %s1827_s20 = sshll.u32 %s2396_s11, 4  ;;  %s1828_s20 = int_to_ptr.vmem [resolvable:$true] %s1827_s20 }
0x205f   :  { %v1705_v53 = vrot.slane %v1552_v42, 2  ;;  %1554 = vrot.lane.b32.xlu2 %v1552_v42, %s2385_s17 }
0x2061   :  { %v2009_v23 = vpack.i.bf16 %v1729_v41, %v1705_v53 }
0x2062   :  { %1812 = vmatpush.bf16.msrb.mxu0 %v1962_v11 }
0x2066   :  { %1813 = vmatpush.bf16.msrb.mxu0 %v1961_v58 }
0x20b9   :  { %v2984_v9 = vpop.permute.xlu2 %1554 }
0x20ba   :  { %1927 = vmatmul.msk.f32.vlgmr.msra.gmra.mxu0 %vm239_vm1, %v2984_v9  ;;  %1928 = vmatmul.msk.f32.vlgmr.msrb.gmra.mxu1 %vm239_vm1, %v2984_v9 }
0x2137   :  { %v1575_v61 = vpop.f32.mrf.mxu0  ;;  %v1595_v31 = vpop.f32.mrf.mxu1 }
0x2138   :  { %v1598_v32 = vsel %vm178_vm2, %v1575_v61, %v1595_v31 }
0x2139   :  { %v1599_v33 = vadd.f32 %v1598_v32, %v2875_v62 }
0x213b   :  { %2114 = vtanh.f32 %v1599_v33  ;;  %v1600_v34 = vmul.f32 0.5, %v1599_v33 }
0x213d   :  { %2116 = vtanh.f32 %v1600_v34 }
0x2141   :  { %v2115_v12 = vpop.eup %2114 }
0x2142   :  { %1607 = vrot.lane.b32.xlu0 %v2115_v12, %s2394_s3 }
0x2143   :  { %v2117_v63 = vpop.eup %2116 }
0x2144   :  { %v1602_v35 = vmul.f32 0.5, %v2117_v63 }
0x2146   :  { %v1603_v36 = vadd.f32 0.5, %v1602_v35 }
0x2148   :  { %v1605_v0 = vmul.f32 %v1603_v36, %v1546_v52 }
0x21b4   :  { %v1608_v39 = vpop.permute.xlu0 %1607 }
0x21b5   :  { %v1610_v26 = vmul.f32 %v1608_v39, %v1603_v36 }
0x21b7   :  { %1612 = vrot.lane.b32.xlu1 %v1610_v26, %s2394_s3 }
0x2229   :  { %v1613_v1 = vpop.permute.xlu1 %1612 }
0x222a   :  { %v1615_v3 = vadd.f32 %v1613_v1, %v1605_v0 }
0x222c   :  { %2118 = vtanh.f32 %v1615_v3 }
0x2232   :  { %v2119_v2 = vpop.eup %2118 }
0x2233   :  { %1618 = vrot.lane.b32.xlu2 %v2119_v2, %s2394_s3 }
0x228d   :  { %v1619_v62 = vpop.permute.xlu2 %1618 }
0x228e   :  { %v1621_v4 = vmul.f32 %v1619_v62, %v1603_v36 }
0x2290   :  { %v1699_v17 = vrot.slane %v1621_v4, 2  ;;  %1623 = vrot.lane.b32.xlu0 %v1621_v4, %s2385_s17 }
0x2292   :  { %v2004_v10 = vpack.i.bf16 %v1723_v16, %v1699_v17 }
0x2302   :  { %v1624_v6 = vpop.permute.xlu0 %1623 }
0x2303   :  { %1929 = vmatmul.msk.f32.vlgmr.msra.gmra.mxu2 %vm239_vm1, %v1624_v6  ;;  %1930 = vmatmul.msk.f32.vlgmr.msra.gmra.mxu3 %vm239_vm1, %v1624_v6 }
0x2386   :  { %v1644_v18 = vpop.f32.mrf.mxu2  ;;  %v1664_v21 = vpop.f32.mrf.mxu3 }
0x2387   :  { %v1667_v24 = vsel %vm178_vm2, %v1644_v18, %v1664_v21 }
0x2388   :  { %v1668_v55 = vadd.f32 %v1667_v24, %v1135_v19 }
0x238a   :  { %2120 = vtanh.f32 %v1668_v55  ;;  %v1669_v48 = vmul.f32 0.5, %v1668_v55 }
0x238c   :  { %2122 = vtanh.f32 %v1669_v48 }
0x2390   :  { %v2121_v7 = vpop.eup %2120 }
0x2391   :  { %1676 = vrot.lane.b32.xlu1 %v2121_v7, %s2394_s3 }
0x2392   :  { %v2123_v50 = vpop.eup %2122 }
0x2393   :  { %v1671_v44 = vmul.f32 0.5, %v2123_v50 }
0x2395   :  { %v1672_v8 = vadd.f32 0.5, %v1671_v44 }
0x2397   :  { %v1674_v40 = vmul.f32 %v1672_v8, %v1615_v3 }
0x2399   :  { %2005 = vrot.lane.b32.xlu1 %v2004_v10, %s2395_s14 }
0x23a1   :  { %2020 = vrot.lane.b32.xlu1 %v2952_v49, %s2395_s14 }
0x2403   :  { %v1677_v38 = vpop.permute.xlu1 %1676 }
0x2404   :  { %v1679_v51 = vmul.f32 %v1677_v38, %v1672_v8 }
0x2406   :  { %1681 = vrot.lane.b32.xlu2 %v1679_v51, %s2394_s3 }
0x240b   :  { %v2006_v46 = vpop.permute.xlu1 %2005 }
0x240c   :  { %v2008_v54 = vunpack.i.h.bf16 %v2006_v46  ;;  %v2007_v57 = vunpack.i.l.bf16 %v2006_v46 }
0x240e   :  { %2010 = vrot.lane.b32.xlu2 %v2009_v23, %s2395_s14  ;;  %v1727_v31 = vsel %vm239_vm1, %v2984_v9, %v2008_v54  ;;  %v1703_v32 = vsel %vm239_vm1, %v2906_v13, %v2007_v57 }
0x240f   :  { %v1752_v26 = vrot.slane %v1727_v31, 6  ;;  %v1743_v0 = vrot.slane %v1703_v32, 6 }
0x2413   :  { %v2021_v28 = vpop.permute.xlu1 %2020 }
0x2414   :  { %v2023_v53 = vunpack.i.h.bf16 %v2021_v28  ;;  %v2022_v23 = vunpack.i.l.bf16 %v2021_v28 }
0x2416   :  { %v1721_v63 = vsel %vm239_vm1, %v2970_v56, %v2022_v23 }
0x2417   :  { %v1763_v2 = vsel %vm309_vm3, %v1721_v63, %v1752_v26 }
0x2460   :  { %v1682_v14 = vpop.permute.xlu2 %1681 }
0x2461   :  { %v1684_v15 = vadd.f32 %v1682_v14, %v1674_v40 }
0x2463   :  { %2124 = vtanh.f32 %v1684_v15 }
0x2468   :  { %v2011_v47 = vpop.permute.xlu2 %2010 }
0x2469   :  { %v2125_v25 = vpop.eup %2124  ;;  %v2013_v52 = vunpack.i.h.bf16 %v2011_v47  ;;  %v2012_v42 = vunpack.i.l.bf16 %v2011_v47 }
0x246a   :  { %1687 = vrot.lane.b32.xlu0 %v2125_v25, %s2394_s3 }
0x246b   :  { %v1733_v61 = vsel %vm239_vm1, %v1624_v6, %v2013_v52  ;;  %v1709_v12 = vsel %vm239_vm1, %v2930_v59, %v2012_v42 }
0x246c   :  { %v1755_v35 = vrot.slane %v1733_v61, 4  ;;  %v1746_v3 = vrot.slane %v1709_v12, 4 }
0x246e   :  { %v1764_v56 = vsel %vm974_vm4, %v1763_v2, %v1755_v35 }
0x24dc   :  { %v1688_v29 = vpop.permute.xlu0 %1687 }
0x24dd   :  { %v1690_v49 = vmul.f32 %v1688_v29, %v1672_v8 }
0x24df   :  { %v1693_v37 = vrot.slane %v1690_v49, 2  ;;  %1734 = vrot.lane.b32.xlu2 %v1690_v49, %s2385_s17 }
0x24e1   :  { %v2014_v22 = vpack.i.bf16 %v1711_v30, %v1693_v37 }
0x24e3   :  { %2015 = vrot.lane.b32.xlu0 %v2014_v22, %s2395_s14 }
0x2539   :  { %v1735_v41 = vpop.permute.xlu2 %1734 }
0x253a   :  { %v1741_v33 = vsel %vm239_vm1, %v1735_v41, %v2023_v53 }
0x253b   :  { %v1758_v1 = vrot.slane %v1741_v33, 2 }
0x253d   :  { %v1765_v16 = vsel %vm976_vm5, %v1764_v56, %v1758_v1 }
0x2555   :  { %v2016_v34 = vpop.permute.xlu0 %2015 }
0x2556   :  { %v2018_v36 = vunpack.i.h.bf16 %v2016_v34  ;;  %v2017_v39 = vunpack.i.l.bf16 %v2016_v34 }
0x2558   :  { %v1715_v9 = vsel %vm239_vm1, %v2954_v5, %v2018_v36  ;;  %v1697_v13 = vsel %vm239_vm1, %v2883_v60, %v2017_v39  ;;  %v2029_v5 = vld [vmem:[#allocation16] ss:$0 sm:$0xff] }
0x2559   :  { %v1749_v59 = vrot.slane %v1715_v9, 2  ;;  %v1760_v62 = vsel %vm309_vm3, %v1697_v13, %v1743_v0 }
0x255a   :  { %v1761_v4 = vsel %vm974_vm4, %v1760_v62, %v1746_v3 }
0x255b   :  { %v1762_v17 = vsel %vm976_vm5, %v1761_v4, %v1749_v59 }
0x255c   :  { %v1766_v10 = vpack.c.bf16 %v1765_v16, %v1762_v17 }
0x255e   :  { %1947 = vmatmul.msk.bf16.vlgmr.msrb.gmra.mxu0 %vm1030_vm6, %v1766_v10 }
0x25db   :  { %v1815_v6 = vpop.f32.mrf.mxu0 }
0x25dc   :  { %v1816_v60 = vadd.f32 %v2029_v5, %v1815_v6 }
0x25de   :  { %1821 = vst.msk [vmem:[#allocation17] sm:$0xff] %vm1820_vm7, %v1816_v60 }
0x25e3   :  { %v1817_v27 = vpop.f32.mrf.mxu0 }
0x25e4   :  { %v1818_v20 = vadd.f32 %v2029_v5, %v1817_v27 }
0x25e6   :  { %1822 = vst.msk [vmem:[#allocation17 + $0x8] sm:$0xff] %vm1820_vm7, %v1818_v20 }
0x25e7   :  { %1835 = dma.vmem_to_hbm [thread:$0]  %s1828_s20, 256, %s1830_s21, [#allocation4], %s2381_s25, %s2381_s25, %s2382_s5  }
0x25e8   :  { %2376 = dma.done.wait [#allocation4], 256  }
0x25e9   :  { %2377 = vsyncadd [#allocation4], 4294967040 }
0x25ea   :  { %1840 = vsyncpa [#allocation3], 1 }
0x25eb   :  { %1841 = vsyncpa [#allocation6], 1 }
0x25ec   :  { %1842 = vsyncpa [#allocation9], 1 }
0x25ed   :  { %1843 = vsyncpa [#allocation12], 1 }
0x25ee   :  { %1844 = vsyncpa [#allocation15], 1 }
0x25ef   :  { %1845 = vsyncpa [#allocation4], 1 }

</bundles_post_ra>
